<compile_context>
chip_gen: v7x
topology: tpu7x:2x2x1
jax: 0.10.0
libtpu: 0.0.40
codegen_flags: <defaults>
</compile_context>

<pallas_src>
import functools

import jax
import jax.numpy as jnp
import numpy as np
from jax import lax
from jax.experimental import pallas as pl
from jax.experimental.pallas import tpu as pltpu


VMEM_LIMIT_BYTES = 32 * 1024 * 1024   # explicit scoped-VMEM budget (safe on v5e/v6e/v7x)


# ----------------------------- helpers (glue) ------------------------------ #

def _round_up(n, m):
    return ((n + m - 1) // m) * m


def extract_patches(style, patch_size, stride):
    """style: (C, Hs, Ws) -> (npatches, C, p, p), PyTorch unfold/permute order."""
    C, Hs, Ws = style.shape
    p, s = patch_size, stride
    n2 = (Hs - p) // s + 1
    n3 = (Ws - p) // s + 1
    rows = []
    for i in range(n2):
        for j in range(n3):
            rows.append(style[:, i * s:i * s + p, j * s:j * s + p])
    return jnp.stack(rows, axis=0)  # (n2*n3, C, p, p)


def im2col(x, p, s):
    """x: (B, C, H, W) -> (B*Ho*Wo, C*p*p); column order (channel, ky, kx)."""
    B, C, H, W = x.shape
    Ho = (H - p) // s + 1
    Wo = (W - p) // s + 1
    cols = []
    for a in range(p):
        for b in range(p):
            cols.append(x[:, :, a:a + (Ho - 1) * s + 1:s, b:b + (Wo - 1) * s + 1:s])
    cols = jnp.stack(cols, axis=2)                       # (B, C, p*p, Ho, Wo)
    cols = cols.reshape(B, C * p * p, Ho * Wo)
    return cols.transpose(0, 2, 1).reshape(B * Ho * Wo, C * p * p)


def index_im2col(idx, p):
    """idx: (B, Hp, Wp) int32 -> (B*H*W, p*p) int32, -1 marks out-of-range offsets."""
    B, Hp, Wp = idx.shape
    H, W = Hp + p - 1, Wp + p - 1
    ip = jnp.pad(idx, ((0, 0), (p - 1, p - 1), (p - 1, p - 1)), constant_values=-1)
    cols = []
    for a in range(p):
        for b in range(p):
            cols.append(ip[:, a:a + H, b:b + W])
    cols = jnp.stack(cols, axis=-1)                      # (B, H, W, p*p), kk = a*p + b
    return cols.reshape(B * H * W, p * p)


# ------------------------------ Pallas kernels ------------------------------ #

def _enc_argmax_kernel(x_ref, w_ref, idx_ref, m_sc, i_sc, *, tn, n_valid):
    """conv_enc (bf16 MXU matmul) fused with maxCoord as an ONLINE argmax over N tiles.

    x_ref : (tm, Kp)   content im2col rows (resident across the N axis)
    w_ref : (Kp, tn)   flattened style patches, N-tile `n`
    idx_ref:(tm, 1)    int32 argmax patch index (written at the last N step)
    m_sc / i_sc: VMEM scratch carrying running max / argmax across N tiles.
    """
    n_t = pl.program_id(1)

    @pl.when(n_t == 0)
    def _():
        m_sc[...] = jnp.full_like(m_sc, -jnp.inf)
        i_sc[...] = jnp.zeros_like(i_sc)

    scores = jnp.dot(x_ref[...], w_ref[...], preferred_element_type=jnp.float32)
    gcol = lax.broadcasted_iota(jnp.int32, scores.shape, 1) + n_t * tn
    scores = jnp.where(gcol < n_valid, scores, -jnp.inf)

    tile_max = jnp.max(scores, axis=1, keepdims=True)                       # (tm, 1)
    # first-index tie-break inside the tile (matches torch/jnp argmax)
    tile_arg = jnp.min(jnp.where(scores == tile_max, gcol, n_valid),
                       axis=1, keepdims=True)                               # (tm, 1)

    better = tile_max > m_sc[...]      # strict > keeps the earlier tile on ties
    m_sc[...] = jnp.where(better, tile_max, m_sc[...])
    i_sc[...] = jnp.where(better, tile_arg, i_sc[...])

    @pl.when(n_t == pl.num_programs(1) - 1)
    def _():
        idx_ref[...] = i_sc[...]


def _dec_from_indices_kernel(idx_ref, w_ref, o_ref, acc_ref, *, tn, pp, normalize):
    """conv_dec + conv_intra normalization driven by argmax indices.

    idx_ref: (tm, pp)      int32 im2col of the (p-1)-padded index map (-1 = invalid)
    w_ref  : (pp, tn, C)   f32 flipped patch pixels for N-tile `n`
    o_ref  : (tm, C)       normalized decoder output (written at the last N step)
    acc_ref: VMEM f32 accumulator carried across N tiles.
    """
    n_t = pl.program_id(1)

    @pl.when(n_t == 0)
    def _():
        acc_ref[...] = jnp.zeros_like(acc_ref)

    idx = idx_ref[...]                                                       # (tm, pp)
    tm = idx.shape[0]
    gcol = lax.broadcasted_iota(jnp.int32, (tm, tn), 1) + n_t * tn

    acc = acc_ref[...]
    for kk in range(pp):                                   # static unroll, pp = p*p
        sel = idx[:, kk:kk + 1]                            # (tm, 1); -1 never matches
        onehot = (gcol == sel).astype(jnp.float32)         # built in VMEM, never in HBM
        acc = acc + jnp.dot(onehot, w_ref[kk], preferred_element_type=jnp.float32)
    acc_ref[...] = acc

    @pl.when(n_t == pl.num_programs(1) - 1)
    def _():
        if normalize:
            cnt = jnp.sum((idx >= 0).astype(jnp.float32), axis=1, keepdims=True)
            cnt = jnp.maximum(cnt, 1.0)                    # padded rows -> no inf/NaN
            o_ref[...] = acc_ref[...] * pl.reciprocal(cnt, approx=False)
        else:
            o_ref[...] = acc_ref[...]


# ------------------------------ kernel wrappers ------------------------------ #

def enc_argmax_indices(xcols, w_kt, n_valid, *, tm=256, tn=512,
                       compute_dtype=jnp.bfloat16):
    """xcols: (M, K) f32, w_kt: (K, N) f32 -> (M,) int32 argmax patch indices."""
    M, K = xcols.shape
    Kp = _round_up(K, 16)                        # bf16 sublane packing friendly
    tm = min(tm, _round_up(M, 8))
    tn = min(tn, _round_up(n_valid, 128))
    Mp = _round_up(M, tm)
    Np = _round_up(n_valid, tn)

    xp = jnp.zeros((Mp, Kp), compute_dtype).at[:M, :K].set(xcols.astype(compute_dtype))
    wp = jnp.zeros((Kp, Np), compute_dtype).at[:K, :n_valid].set(w_kt.astype(compute_dtype))

    kernel = functools.partial(_enc_argmax_kernel, tn=tn, n_valid=n_valid)
    idx = pl.pallas_call(
        kernel,
        out_shape=jax.ShapeDtypeStruct((Mp, 1), jnp.int32),
        grid=(Mp // tm, Np // tn),
        in_specs=[pl.BlockSpec((tm, Kp), lambda i, n: (i, 0)),
                  pl.BlockSpec((Kp, tn), lambda i, n: (0, n))],
        out_specs=pl.BlockSpec((tm, 1), lambda i, n: (i, 0)),
        scratch_shapes=[pltpu.VMEM((tm, 1), jnp.float32),
                        pltpu.VMEM((tm, 1), jnp.int32)],
        compiler_params=pltpu.CompilerParams(
            dimension_semantics=("parallel", "arbitrary"),
            vmem_limit_bytes=VMEM_LIMIT_BYTES),
    )(xp, wp)
    return idx[:M, 0]


def dec_from_indices(idx_cols, w_stack, n_valid, *, tm=256, tn=512, normalize=True):
    """idx_cols: (Mo, p*p) int32, w_stack: (p*p, N, C) f32 -> (Mo, C) f32."""
    Mo, pp = idx_cols.shape
    _, N, C = w_stack.shape
    assert N == n_valid
    tm = min(tm, _round_up(Mo, 8))
    tn = min(tn, _round_up(N, 128))
    Mp = _round_up(Mo, tm)
    Np = _round_up(N, tn)

    idxp = jnp.full((Mp, pp), -1, jnp.int32).at[:Mo].set(idx_cols)
    wp = jnp.zeros((pp, Np, C), jnp.float32).at[:, :N, :].set(w_stack)

    kernel = functools.partial(_dec_from_indices_kernel, tn=tn, pp=pp,
                               normalize=normalize)
    out = pl.pallas_call(
        kernel,
        out_shape=jax.ShapeDtypeStruct((Mp, C), jnp.float32),
        grid=(Mp // tm, Np // tn),
        in_specs=[pl.BlockSpec((tm, pp), lambda i, n: (i, 0)),
                  pl.BlockSpec((pp, tn, C), lambda i, n: (0, n, 0))],
        out_specs=pl.BlockSpec((tm, C), lambda i, n: (i, 0)),
        scratch_shapes=[pltpu.VMEM((tm, C), jnp.float32)],
        compiler_params=pltpu.CompilerParams(
            dimension_semantics=("parallel", "arbitrary"),
            vmem_limit_bytes=VMEM_LIMIT_BYTES),
    )(idxp, wp)
    return out[:Mo]


# ------------------------------ StyleSwap wrapper --------------------------- #

class StyleSwapPallas:
    def __init__(self, style_img, patch_size, stride=1, shuffle=False,
                 interpolate=True, compute_dtype=jnp.bfloat16):
        assert style_img.ndim == 3
        assert stride == 1        # see TODO(synk) at top of file
        assert not shuffle        # torch.randperm shuffle path not implemented
        self.style_img = style_img
        self.patch_size = patch_size
        self.stride = stride
        self.interpolate = interpolate
        self.compute_dtype = compute_dtype

        self.patches = extract_patches(style_img, patch_size, stride)   # (N, C, p, p)
        self.npatches = int(self.patches.shape[0])
        C = style_img.shape[0]
        p = patch_size
        # conv_enc weight == raw patches (the PyTorch `.mul` "normalization" result is
        # discarded), flattened to (K, N) for the MXU matmul.
        self.w_enc_kt = self.patches.reshape(self.npatches, C * p * p).T  # (K, N) f32
        # Decoder weight stack: w_dec_stack[a*p + b] = patches[:, :, p-1-a, p-1-b]
        # (ConvTranspose2d(stride=1) == conv with flipped kernel over a (p-1)-padded map)
        flipped = jnp.flip(self.patches, axis=(2, 3))                     # (N, C, p, p)
        self.w_dec_stack = flipped.transpose(2, 3, 0, 1).reshape(p * p, self.npatches, C)

    def __call__(self, content, *, tm=256, tn=512):
        assert content.ndim == 4
        assert content.shape[1] == self.style_img.shape[0]
        B, C, H, W = content.shape
        p = self.patch_size
        Hp, Wp = H - p + 1, W - p + 1

        # kernel 1: conv_enc + maxCoord -> int32 patch indices (no dense one-hot)
        xcols = im2col(content, p, 1)                                     # (B*Hp*Wp, C*p*p)
        idx = enc_argmax_indices(xcols, self.w_enc_kt, self.npatches,
                                 tm=tm, tn=tn, compute_dtype=self.compute_dtype)
        idx = idx.reshape(B, Hp, Wp)

        # kernel 2: conv_dec (+ conv_intra division) from the index map
        idx_cols = index_im2col(idx, p)                                   # (B*H*W, p*p)
        out = dec_from_indices(idx_cols, self.w_dec_stack, self.npatches,
                               tm=tm, tn=tn, normalize=self.interpolate)  # (B*H*W, C)
        return out.reshape(B, H, W, C).transpose(0, 3, 1, 2)


# ------------------------------ pure-JAX reference -------------------------- #

def _ref_conv_transpose(mid, weight, stride=1):
    """Direct transcription of ConvTranspose2d (no padding)."""
    B, N, Hp, Wp = mid.shape
    _, C, p, _ = weight.shape
    H = (Hp - 1) * stride + p
    W = (Wp - 1) * stride + p
    out = jnp.zeros((B, C, H, W), jnp.float32)
    for i in range(Hp):
        for j in range(Wp):
            contrib = jnp.einsum('bn,ncij->bcij', mid[:, :, i, j], weight)
            out = out.at[:, :, i * stride:i * stride + p, j * stride:j * stride + p].add(contrib)
    return out


def reference_forward(content, patches, p, compute_dtype=jnp.bfloat16, stride=1):
    N = patches.shape[0]
    # The selection path matches the kernel's precision (inputs rounded to the compute
    # dtype, products/accumulation in f32); the decode path stays full f32.
    c_r = content.astype(compute_dtype).astype(jnp.float32)
    p_r = patches.astype(compute_dtype).astype(jnp.float32)
    scores = lax.conv_general_dilated(
        c_r, p_r, (stride, stride), 'VALID',
        dimension_numbers=('NCHW', 'OIHW', 'NCHW'))
    best = jnp.argmax(scores, axis=1)
    onehot = jax.nn.one_hot(best, N, axis=1, dtype=jnp.float32)
    dec = _ref_conv_transpose(onehot, patches, stride)
    cnt = _ref_conv_transpose(onehot, jnp.ones_like(patches), stride)
    return dec / cnt


# ------------------------------------ main ----------------------------------- #

if __name__ == "__main__":
    key = jax.random.PRNGKey(0)
    k_style, k_content = jax.random.split(key)

    C, Hs, Ws = 4, 8, 8
    patch_size = 3
    B, H, W = 2, 16, 16

    style_img = jax.random.normal(k_style, (C, Hs, Ws), dtype=jnp.float32)
    content = jax.random.normal(k_content, (B, C, H, W), dtype=jnp.float32)

    swap = StyleSwapPallas(style_img, patch_size, stride=1, interpolate=True)
    out = jax.block_until_ready(swap(content))
    assert out.shape == (B, C, H, W), out.shape

    ref = jax.block_until_ready(
        reference_forward(content, swap.patches, patch_size,
                          compute_dtype=swap.compute_dtype))
    np.testing.assert_allclose(np.asarray(out), np.asarray(ref), rtol=1e-4, atol=1e-4)

    print("KERNEL_OK")
</pallas_src>

<mosaic_0001>
module attributes {stable_mosaic.version = 11 : i64} {
  func.func @_enc_argmax_kernel(%arg0: i32, %arg1: i32, %arg2: memref<256x48xbf16, #tpu.memory_space<vmem>>, %arg3: memref<48x128xbf16, #tpu.memory_space<vmem>>, %arg4: memref<256x1xi32, #tpu.memory_space<vmem>>, %arg5: memref<256x1xf32, #tpu.memory_space<vmem>>, %arg6: memref<256x1xi32, #tpu.memory_space<vmem>>) attributes {dimension_semantics = [#tpu.dimension_semantics<parallel>, #tpu.dimension_semantics<arbitrary>], iteration_bounds = array<i64: 2, 1>, scalar_prefetch = 0 : i64, scratch_operands = 2 : i64, tpu.core_type = #tpu.core_type<tc>, window_params = [{transform_indices = @transform_0, window_bounds = array<i64: 256, 48>}, {transform_indices = @transform_1, window_bounds = array<i64: 48, 128>}, {transform_indices = @transform_2, window_bounds = array<i64: 256, 1>}]} {
    %c0_i32 = arith.constant 0 : i32
    %0 = arith.cmpi eq, %arg1, %c0_i32 : i32
    %1 = arith.extui %0 : i1 to i32
    %c0_i32_0 = arith.constant 0 : i32
    %2 = arith.cmpi ne, %1, %c0_i32_0 : i32
    scf.if %2 {
      %cst_20 = arith.constant 0xFF800000 : f32
      %33 = vector.broadcast %cst_20 : f32 to vector<256x1xf32>
      %c0_21 = arith.constant 0 : index
      %c0_22 = arith.constant 0 : index
      %34 = vector.load %arg5[%c0_21, %c0_22] : memref<256x1xf32, #tpu.memory_space<vmem>>, vector<256x1xf32>
      tpu.vector_store %arg5[%c0_21, %c0_22], %33 {strides = array<i32>} : memref<256x1xf32, #tpu.memory_space<vmem>>, vector<256x1xf32>,
      %c0_i32_23 = arith.constant 0 : i32
      %35 = vector.broadcast %c0_i32_23 : i32 to vector<256x1xi32>
      %c0_24 = arith.constant 0 : index
      %c0_25 = arith.constant 0 : index
      %36 = vector.load %arg6[%c0_24, %c0_25] : memref<256x1xi32, #tpu.memory_space<vmem>>, vector<256x1xi32>
      tpu.vector_store %arg6[%c0_24, %c0_25], %35 {strides = array<i32>} : memref<256x1xi32, #tpu.memory_space<vmem>>, vector<256x1xi32>,
    } else {
    }
    %c0 = arith.constant 0 : index
    %c0_1 = arith.constant 0 : index
    %3 = vector.load %arg2[%c0, %c0_1] : memref<256x48xbf16, #tpu.memory_space<vmem>>, vector<256x48xbf16>
    %c0_2 = arith.constant 0 : index
    %c0_3 = arith.constant 0 : index
    %4 = vector.load %arg3[%c0_2, %c0_3] : memref<48x128xbf16, #tpu.memory_space<vmem>>, vector<48x128xbf16>
    %cst = arith.constant dense<0.000000e+00> : vector<256x128xf32>
    %5 = tpu.matmul %3, %4, %cst {dimension_numbers = #tpu.dot_dimension_numbers<[1], [0], [0], [1], [0, 0, 1, 1], [], []>} : vector<256x48xbf16>, vector<48x128xbf16>, vector<256x128xf32> -> vector<256x128xf32>
    %6 = tpu.iota {dimensions = array<i32: 1>} : vector<256x128xi32>
    %c128_i32 = arith.constant 128 : i32
    %7 = arith.muli %arg1, %c128_i32 : i32
    %8 = vector.broadcast %7 : i32 to vector<256x128xi32>
    %9 = arith.addi %6, %8 : vector<256x128xi32>
    %c36_i32 = arith.constant 36 : i32
    %10 = vector.broadcast %c36_i32 : i32 to vector<256x128xi32>
    %11 = arith.cmpi slt, %9, %10 : vector<256x128xi32>
    %cst_4 = arith.constant 0xFF800000 : f32
    %12 = vector.broadcast %cst_4 : f32 to vector<256x128xf32>
    %13 = arith.select %11, %5, %12 : vector<256x128xi1>, vector<256x128xf32>
    %cst_5 = arith.constant dense<0xFF800000> : vector<256xf32>
    %14 = vector.multi_reduction <maximumf>, %13, %cst_5 [1] : vector<256x128xf32> to vector<256xf32>
    %15 = vector.shape_cast %14 : vector<256xf32> to vector<256x1xf32>
    %16 = vector.broadcast %15 : vector<256x1xf32> to vector<256x128xf32>
    %17 = arith.cmpf oeq, %13, %16 : vector<256x128xf32>
    %c36_i32_6 = arith.constant 36 : i32
    %18 = vector.broadcast %c36_i32_6 : i32 to vector<256x128xi32>
    %19 = arith.select %17, %9, %18 : vector<256x128xi1>, vector<256x128xi32>
    %cst_7 = arith.constant dense<2147483647> : vector<256xi32>
    %20 = vector.multi_reduction <minsi>, %19, %cst_7 [1] : vector<256x128xi32> to vector<256xi32>
    %21 = vector.shape_cast %20 : vector<256xi32> to vector<256x1xi32>
    %c0_8 = arith.constant 0 : index
    %c0_9 = arith.constant 0 : index
    %22 = vector.load %arg5[%c0_8, %c0_9] : memref<256x1xf32, #tpu.memory_space<vmem>>, vector<256x1xf32>
    %23 = arith.cmpf ogt, %15, %22 : vector<256x1xf32>
    %c0_10 = arith.constant 0 : index
    %c0_11 = arith.constant 0 : index
    %24 = vector.load %arg5[%c0_10, %c0_11] : memref<256x1xf32, #tpu.memory_space<vmem>>, vector<256x1xf32>
    %25 = arith.select %23, %15, %24 : vector<256x1xi1>, vector<256x1xf32>
    %c0_12 = arith.constant 0 : index
    %c0_13 = arith.constant 0 : index
    %26 = vector.load %arg5[%c0_12, %c0_13] : memref<256x1xf32, #tpu.memory_space<vmem>>, vector<256x1xf32>
    tpu.vector_store %arg5[%c0_12, %c0_13], %25 {strides = array<i32>} : memref<256x1xf32, #tpu.memory_space<vmem>>, vector<256x1xf32>,
    %c0_14 = arith.constant 0 : index
    %c0_15 = arith.constant 0 : index
    %27 = vector.load %arg6[%c0_14, %c0_15] : memref<256x1xi32, #tpu.memory_space<vmem>>, vector<256x1xi32>
    %28 = arith.select %23, %21, %27 : vector<256x1xi1>, vector<256x1xi32>
    %c0_16 = arith.constant 0 : index
    %c0_17 = arith.constant 0 : index
    %29 = vector.load %arg6[%c0_16, %c0_17] : memref<256x1xi32, #tpu.memory_space<vmem>>, vector<256x1xi32>
    tpu.vector_store %arg6[%c0_16, %c0_17], %28 {strides = array<i32>} : memref<256x1xi32, #tpu.memory_space<vmem>>, vector<256x1xi32>,
    %c0_i32_18 = arith.constant 0 : i32
    %30 = arith.cmpi eq, %arg1, %c0_i32_18 : i32
    %31 = arith.extui %30 : i1 to i32
    %c0_i32_19 = arith.constant 0 : i32
    %32 = arith.cmpi ne, %31, %c0_i32_19 : i32
    scf.if %32 {
      %c0_20 = arith.constant 0 : index
      %c0_21 = arith.constant 0 : index
      %33 = vector.load %arg6[%c0_20, %c0_21] : memref<256x1xi32, #tpu.memory_space<vmem>>, vector<256x1xi32>
      %c0_22 = arith.constant 0 : index
      %c0_23 = arith.constant 0 : index
      %34 = vector.load %arg4[%c0_22, %c0_23] : memref<256x1xi32, #tpu.memory_space<vmem>>, vector<256x1xi32>
      tpu.vector_store %arg4[%c0_22, %c0_23], %33 {strides = array<i32>} : memref<256x1xi32, #tpu.memory_space<vmem>>, vector<256x1xi32>,
    } else {
    }
    return
  }
  func.func @transform_0(%arg0: i32, %arg1: i32) -> (i32, i32) {
    %c0_i32 = arith.constant 0 : i32
    %c0_i32_0 = arith.constant 0 : i32
    return %arg0, %c0_i32 : i32, i32
  }
  func.func @transform_1(%arg0: i32, %arg1: i32) -> (i32, i32) {
    %c0_i32 = arith.constant 0 : i32
    %c0_i32_0 = arith.constant 0 : i32
    return %c0_i32, %arg1 : i32, i32
  }
  func.func @transform_2(%arg0: i32, %arg1: i32) -> (i32, i32) {
    %c0_i32 = arith.constant 0 : i32
    %c0_i32_0 = arith.constant 0 : i32
    return %arg0, %c0_i32 : i32, i32
  }
}

</mosaic_0001>

<bundles_post_ra>
// kernel: tpu_custom_call.1
= control target key start
LH: loop header
LB: loop body
LE: loop exit
PB: predicated region body
PF: predicated region fallthrough
CT: control target
= control target key end

     0   :  { %s1774_s9 = smov 0   ;;  %s1776_s10 = smov 0   ;;  %s3139_s0 = inlined_call_operand.vmem [shape: bf16[512,48], index: 0, kind: input, shape index: {}]   ;;  %s3140_s1 = inlined_call_operand.vmem [shape: bf16[48,128], index: 1, kind: input, shape index: {}]   ;;  %s3141_s2 = inlined_call_operand.vmem [shape: s32[512,1], index: 2, kind: output, shape index: {}]  }
   0x1   :  { %s1778_s11 = smov 0  }
   0x2 LB: > { %s24_s12 = sadd.s32 1, %s1751_s10  ;;  %p1583_p0 = scmp.ge.s32.totalorder %s1755_s11, 1  ;;  %s1755_s11 = sphi %s1778_s11, %s12_s11   ;;  %s1751_s10 = sphi %s1776_s10, %s3410_s10   ;;  %s1747_s9 = sphi %s1774_s9, %s3409_s9  }
   0x3   : > { %p26_p1 = scmp.ge.s32.totalorder %s24_s12, 2  ;;  %p134_p2 = scmp.lt.s32.totalorder %s1755_s11, 3 }
   0x5   : > { %s3412_s12 = smov (%p26_p1, %s24_s12), 0  ;;  %p135_p3 = pnand %p1583_p0, %p134_p2 }
   0x7   : > { %138 = sbr.rel (%p135_p3) target bundleno = 752 (0x2f0), region = 28 }
   0xe   : > { %v1714_v0 = vld [vmem:[%s3140_s1] sm:$0xff]   ;;  %s1584_s15 = sshll.u32 %s1747_s9, 5  ;;  %v1715_v1 = vld [vmem:[%s3140_s1 + $0x8] sm:$0xff]   ;;  %v1716_v2 = vld [vmem:[%s3140_s1 + $0x10] sm:$0xff]   ;;  %vm382_vm0 = vcmask 392192   ;;  %vm181_vm1 = vcmask 7168   ;;  %v592_v20 = vlaneseq }
   0xf   : > { %p161_p4 = scmp.lt.s32.totalorder %s1584_s15, 63  ;;  %1644 = vmatprep.subr.bf16.mxu0 %v1714_v0  ;;  %1682 = vmatprep.subr.bf16.mxu1 %v1714_v0  ;;  %v1757_v19 = vmov -inf  }
  0x10   : > { %1645 = vmatpush3.bf16.msra.mxu0 %v1714_v0  ;;  %1685 = vmatpush3.bf16.msra.mxu1 %v1714_v0  ;;  %200 = vst.msk [vmem:[#allocation2 + $0x90] sm:$0xff] %vm181_vm1, %v1757_v19  ;;  %182 = vst.msk [vmem:[#allocation2] sm:$0xff] %vm181_vm1, %v1757_v19  ;;  %v1873_v21 = vand.u32 127, %v592_v20 }
  0x11   : > { %s3414_s15 = smov (!%p161_p4, %s1584_s15), 63  ;;  %1646 = vmatprep.subr.bf16.mxu0 %v1715_v1  ;;  %1683 = vmatprep.subr.bf16.mxu1 %v1715_v1  ;;  %183 = vst.msk [vmem:[#allocation2 + $0x8] sm:$0xff] %vm181_vm1, %v1757_v19  ;;  %184 = vst.msk [vmem:[#allocation2 + $0x10] sm:$0xff] %vm181_vm1, %v1757_v19 }
  0x12   : > { %s1585_s20 = sshll.u32 %s3414_s15, 2  ;;  %185 = vst.msk [vmem:[#allocation2 + $0x18] sm:$0xff] %vm181_vm1, %v1757_v19  ;;  %186 = vst.msk [vmem:[#allocation2 + $0x20] sm:$0xff] %vm181_vm1, %v1757_v19  ;;  %vm597_vm2 = vcmp.lt.s32.totalorder %v1873_v21, 36  ;;  %s1587_s24 = sshll.u32 %s3414_s15, 3 }
  0x13   : > { %s1807_s23 = scalar_lea.vmem %s3139_s0, %s1585_s20  ;;  %187 = vst.msk [vmem:[#allocation2 + $0x28] sm:$0xff] %vm181_vm1, %v1757_v19  ;;  %188 = vst.msk [vmem:[#allocation2 + $0x30] sm:$0xff] %vm181_vm1, %v1757_v19  ;;  %s2923_s27 = scalar_lea.vmem %s3141_s2, %s1587_s24 }
  0x14   : > { %1647 = vmatpush3.bf16.msra.mxu0 %v1715_v1  ;;  %1686 = vmatpush3.bf16.msra.mxu1 %v1715_v1  ;;  %v1717_v3 = vld [vmem:[%s1807_s23] sm:$0xff]   ;;  %v1719_v5 = vld [vmem:[%s1807_s23 + $0x8] sm:$0xff]   ;;  %v1721_v7 = vld [vmem:[%s1807_s23 + $0x10] sm:$0xff]   ;;  %189 = vst.msk [vmem:[#allocation2 + $0x38] sm:$0xff] %vm181_vm1, %v1757_v19 }
  0x15   : > { %1648 = vmatprep.subr.bf16.mxu0 %v1716_v2  ;;  %1684 = vmatprep.subr.bf16.mxu1 %v1716_v2  ;;  %v1718_v4 = vld [vmem:[%s1807_s23 + $0x40] sm:$0xff]   ;;  %v1720_v6 = vld [vmem:[%s1807_s23 + $0x48] sm:$0xff]   ;;  %v1723_v8 = vld [vmem:[%s1807_s23 + $0x50] sm:$0xff]   ;;  %190 = vst.msk [vmem:[#allocation2 + $0x40] sm:$0xff] %vm181_vm1, %v1757_v19 }
  0x16   : > { %1650 = vmatprep.mubr.msk.bf16.mxu0 %vm382_vm0, %v1717_v3  ;;  %1666 = vmatprep.mubr.msk.bf16.mxu1 %vm382_vm0, %v1718_v4  ;;  %v1722_v9 = vld [vmem:[%s1807_s23 + $0x18] sm:$0xff]   ;;  %v1725_v11 = vld [vmem:[%s1807_s23 + $0x20] sm:$0xff]   ;;  %v1726_v13 = vld [vmem:[%s1807_s23 + $0x28] sm:$0xff]   ;;  %191 = vst.msk [vmem:[#allocation2 + $0x48] sm:$0xff] %vm181_vm1, %v1757_v19 }
  0x17   : > { %v1724_v10 = vld [vmem:[%s1807_s23 + $0x58] sm:$0xff]   ;;  %v1727_v12 = vld [vmem:[%s1807_s23 + $0x60] sm:$0xff]   ;;  %v1728_v14 = vld [vmem:[%s1807_s23 + $0x68] sm:$0xff]   ;;  %192 = vst.msk [vmem:[#allocation2 + $0x50] sm:$0xff] %vm181_vm1, %v1757_v19 }
  0x18   : > { %1649 = vmatpush3.bf16.msra.mxu0 %v1716_v2  ;;  %1687 = vmatpush3.bf16.msra.mxu1 %v1716_v2  ;;  %v1729_v15 = vld [vmem:[%s1807_s23 + $0x30] sm:$0xff]   ;;  %v1730_v17 = vld [vmem:[%s1807_s23 + $0x38] sm:$0xff]   ;;  %193 = vst.msk [vmem:[#allocation2 + $0x58] sm:$0xff] %vm181_vm1, %v1757_v19  ;;  %194 = vst.msk [vmem:[#allocation2 + $0x60] sm:$0xff] %vm181_vm1, %v1757_v19 }
  0x19   : > { %v1731_v16 = vld [vmem:[%s1807_s23 + $0x70] sm:$0xff]   ;;  %v1732_v18 = vld [vmem:[%s1807_s23 + $0x78] sm:$0xff]   ;;  %195 = vst.msk [vmem:[#allocation2 + $0x68] sm:$0xff] %vm181_vm1, %v1757_v19  ;;  %196 = vst.msk [vmem:[#allocation2 + $0x70] sm:$0xff] %vm181_vm1, %v1757_v19 }
  0x1a   : > { %197 = vst.msk [vmem:[#allocation2 + $0x78] sm:$0xff] %vm181_vm1, %v1757_v19  ;;  %198 = vst.msk [vmem:[#allocation2 + $0x80] sm:$0xff] %vm181_vm1, %v1757_v19 }
  0x1b   : > { %1651 = vmatmul.mubr.msk.bf16.vlgmr.msra.gmra.mrb[0].mxu0 %vm382_vm0, %v1719_v5  ;;  %1667 = vmatmul.mubr.msk.bf16.vlgmr.msra.gmra.mrb[0].mxu1 %vm382_vm0, %v1720_v6  ;;  %199 = vst.msk [vmem:[#allocation2 + $0x88] sm:$0xff] %vm181_vm1, %v1757_v19  ;;  %201 = vst.msk [vmem:[#allocation2 + $0x98] sm:$0xff] %vm181_vm1, %v1757_v19 }
  0x1c   : > { %1654 = vmatprep.mubr.msk.bf16.mxu0 %vm382_vm0, %v1721_v7  ;;  %1670 = vmatprep.mubr.msk.bf16.mxu1 %vm382_vm0, %v1723_v8  ;;  %202 = vst.msk [vmem:[#allocation2 + $0xa0] sm:$0xff] %vm181_vm1, %v1757_v19  ;;  %203 = vst.msk [vmem:[#allocation2 + $0xa8] sm:$0xff] %vm181_vm1, %v1757_v19 }
  0x1d   : > { %204 = vst.msk [vmem:[#allocation2 + $0xb0] sm:$0xff] %vm181_vm1, %v1757_v19  ;;  %205 = vst.msk [vmem:[#allocation2 + $0xb8] sm:$0xff] %vm181_vm1, %v1757_v19 }
  0x1e   : > { %206 = vst.msk [vmem:[#allocation2 + $0xc0] sm:$0xff] %vm181_vm1, %v1757_v19  ;;  %207 = vst.msk [vmem:[#allocation2 + $0xc8] sm:$0xff] %vm181_vm1, %v1757_v19 }
  0x1f   : > { %208 = vst.msk [vmem:[#allocation2 + $0xd0] sm:$0xff] %vm181_vm1, %v1757_v19  ;;  %209 = vst.msk [vmem:[#allocation2 + $0xd8] sm:$0xff] %vm181_vm1, %v1757_v19 }
  0x20   : > { %210 = vst.msk [vmem:[#allocation2 + $0xe0] sm:$0xff] %vm181_vm1, %v1757_v19  ;;  %211 = vst.msk [vmem:[#allocation2 + $0xe8] sm:$0xff] %vm181_vm1, %v1757_v19 }
  0x21   : > { %212 = vst.msk [vmem:[#allocation2 + $0xf0] sm:$0xff] %vm181_vm1, %v1757_v19  ;;  %213 = vst.msk [vmem:[#allocation2 + $0xf8] sm:$0xff] %vm181_vm1, %v1757_v19 }
  0x23   : > { %1655 = vmatmul.mubr.msk.bf16.gmra.mrb[4].mxu0 %vm382_vm0, %v1722_v9  ;;  %1671 = vmatmul.mubr.msk.bf16.gmra.mrb[4].mxu1 %vm382_vm0, %v1724_v10 }
  0x24   : > { %1658 = vmatprep.mubr.msk.bf16.mxu0 %vm382_vm0, %v1725_v11  ;;  %1674 = vmatprep.mubr.msk.bf16.mxu1 %vm382_vm0, %v1727_v12 }
  0x2b   : > { %1659 = vmatmul.mubr.msk.bf16.gmra.mrb[8].mxu0 %vm382_vm0, %v1726_v13  ;;  %1675 = vmatmul.mubr.msk.bf16.gmra.mrb[8].mxu1 %vm382_vm0, %v1728_v14 }
  0x2c   : > { %1662 = vmatprep.mubr.msk.bf16.mxu0 %vm382_vm0, %v1729_v15  ;;  %1678 = vmatprep.mubr.msk.bf16.mxu1 %vm382_vm0, %v1731_v16 }
  0x33   : > { %1663 = vmatmul.mubr.msk.bf16.gmra.mrb[12].mxu0 %vm382_vm0, %v1730_v17  ;;  %1679 = vmatmul.mubr.msk.bf16.gmra.mrb[12].mxu1 %vm382_vm0, %v1732_v18 }
  0xee   : > { %v1652_v22 = vpop.f32.mrb[0].mxu0  ;;  %v1668_v23 = vpop.f32.mrb[0].mxu1 }
  0xef   : > { %v465_v24 = vpop.f32.mrb[1].mxu0  ;;  %v529_v25 = vpop.f32.mrb[1].mxu1  ;;  %v1878_v26 = vsel %vm597_vm2, %v1668_v23, -inf  ;;  %v1882_v27 = vsel %vm597_vm2, %v1652_v22, -inf  ;;  %v2036_v23 = vld [vmem:[#allocation2 + $0x90] sm:$0xff] }
  0xf0   : > { %666 = vmax.xlane.f32.xlu0 %v1878_v26  ;;  %v1669_v28 = vpop.f32.mrb[2].mxu1  ;;  %634 = vmax.xlane.f32.xlu1 %v1882_v27  ;;  %v1653_v29 = vpop.f32.mrb[2].mxu0  ;;  %v1888_v32 = vsel %vm597_vm2, %v465_v24, -inf  ;;  %v1898_v36 = vsel %vm597_vm2, %v529_v25, -inf  ;;  %3238 = vst [vmem:[#allocation4_spill] sm:$0xff] %v2036_v23  ;;  %v2038_v24 = vld [vmem:[#allocation2 + $0x10] sm:$0xff] }
  0xf1   : > { %v468_v30 = vpop.f32.mrb[3].mxu0  ;;  %v532_v31 = vpop.f32.mrb[3].mxu1  ;;  %v1892_v33 = vsel %vm597_vm2, %v1653_v29, -inf  ;;  %v1902_v37 = vsel %vm597_vm2, %v1669_v28, -inf  ;;  %3239 = vst [vmem:[#allocation5_spill] sm:$0xff] %v2038_v24 }
  0xf2   : > { %v1908_v44 = vsel %vm597_vm2, %v532_v31, -inf  ;;  %v1912_v45 = vsel %vm597_vm2, %v468_v30, -inf  ;;  %v2062_v30 = vld [vmem:[#allocation2] sm:$0xff]  ;;  %v2064_v31 = vld [vmem:[#allocation2 + $0x18] sm:$0xff] }
  0xf3   : > { %3242 = vst [vmem:[#allocation8_spill] sm:$0xff] %v2062_v30  ;;  %3243 = vst [vmem:[#allocation9_spill] sm:$0xff] %v2064_v31 }
  0xf4   : > { %630 = vmax.xlane.f32.xlu0 %v1888_v32  ;;  %636 = vmax.xlane.f32.xlu1 %v1892_v33 }
  0xf6   : > { %v1656_v34 = vpop.f32.mrb[4].mxu0  ;;  %v1672_v35 = vpop.f32.mrb[4].mxu1 }
  0xf7   : > { %v481_v38 = vpop.f32.mrb[5].mxu0  ;;  %v545_v39 = vpop.f32.mrb[5].mxu1  ;;  %v1918_v46 = vsel %vm597_vm2, %v1656_v34, -inf  ;;  %v1928_v54 = vsel %vm597_vm2, %v1672_v35, -inf }
  0xf8   : > { %662 = vmax.xlane.f32.xlu0 %v1898_v36  ;;  %668 = vmax.xlane.f32.xlu1 %v1902_v37  ;;  %v1657_v40 = vpop.f32.mrb[6].mxu0  ;;  %v1673_v41 = vpop.f32.mrb[6].mxu1  ;;  %v1938_v60 = vsel %vm597_vm2, %v481_v38, -inf  ;;  %v1948_v4 = vsel %vm597_vm2, %v545_v39, -inf }
  0xf9   : > { %v484_v42 = vpop.f32.mrb[7].mxu0  ;;  %v548_v43 = vpop.f32.mrb[7].mxu1  ;;  %v1922_v47 = vsel %vm597_vm2, %v1657_v40, -inf  ;;  %v1932_v55 = vsel %vm597_vm2, %v1673_v41, -inf }
  0xfa   : > { %v1942_v61 = vsel %vm597_vm2, %v484_v42, -inf  ;;  %v1952_v5 = vsel %vm597_vm2, %v548_v43, -inf  ;;  %v2100_v43 = vld [vmem:[#allocation2 + $0x80] sm:$0xff] }
  0xfb   : > { %3246 = vst [vmem:[#allocation12_spill] sm:$0xff] %v2100_v43 }
  0xfc   : > { %664 = vmax.xlane.f32.xlu1 %v1908_v44  ;;  %632 = vmax.xlane.f32.xlu0 %v1912_v45 }
  0xfe   : > { %v1660_v48 = vpop.f32.mrb[8].mxu0  ;;  %v1676_v49 = vpop.f32.mrb[8].mxu1 }
  0xff   : > { %v497_v50 = vpop.f32.mrb[9].mxu0  ;;  %v561_v51 = vpop.f32.mrb[9].mxu1  ;;  %v1958_v6 = vsel %vm597_vm2, %v1660_v48, -inf  ;;  %v1968_v8 = vsel %vm597_vm2, %v1676_v49, -inf }
 0x100   : > { %642 = vmax.xlane.f32.xlu0 %v1918_v46  ;;  %644 = vmax.xlane.f32.xlu1 %v1922_v47  ;;  %v1661_v52 = vpop.f32.mrb[10].mxu0  ;;  %v1677_v53 = vpop.f32.mrb[10].mxu1  ;;  %v1978_v10 = vsel %vm597_vm2, %v497_v50, -inf  ;;  %v1988_v12 = vsel %vm597_vm2, %v561_v51, -inf }
 0x101   : > { %v500_v56 = vpop.f32.mrb[11].mxu0  ;;  %v564_v57 = vpop.f32.mrb[11].mxu1  ;;  %v1962_v7 = vsel %vm597_vm2, %v1661_v52, -inf  ;;  %v1972_v9 = vsel %vm597_vm2, %v1677_v53, -inf }
 0x102   : > { %v1982_v11 = vsel %vm597_vm2, %v500_v56, -inf  ;;  %v1992_v13 = vsel %vm597_vm2, %v564_v57, -inf }
 0x104   : > { %674 = vmax.xlane.f32.xlu0 %v1928_v54  ;;  %676 = vmax.xlane.f32.xlu1 %v1932_v55 }
 0x106   : > { %v1664_v58 = vpop.f32.mrb[12].mxu0  ;;  %v1680_v59 = vpop.f32.mrb[12].mxu1 }
 0x107   : > { %v513_v62 = vpop.f32.mrb[13].mxu0  ;;  %v577_v63 = vpop.f32.mrb[13].mxu1  ;;  %v1998_v14 = vsel %vm597_vm2, %v1664_v58, -inf  ;;  %v2028_v20 = vsel %vm597_vm2, %v1680_v59, -inf  ;;  %v2140_v58 = vld [vmem:[#allocation2 + $0x88] sm:$0xff] }
 0x108   : > { %638 = vmax.xlane.f32.xlu0 %v1938_v60  ;;  %640 = vmax.xlane.f32.xlu1 %v1942_v61  ;;  %v1665_v0 = vpop.f32.mrb[14].mxu0  ;;  %v1681_v1 = vpop.f32.mrb[14].mxu1  ;;  %v2008_v16 = vsel %vm597_vm2, %v513_v62, -inf  ;;  %v2018_v18 = vsel %vm597_vm2, %v577_v63, -inf  ;;  %3250 = vst [vmem:[#allocation16_spill] sm:$0xff] %v2140_v58 }
 0x109   : > { %v516_v2 = vpop.f32.mrb[15].mxu0  ;;  %v580_v3 = vpop.f32.mrb[15].mxu1  ;;  %v2002_v15 = vsel %vm597_vm2, %v1665_v0, -inf  ;;  %v2032_v22 = vsel %vm597_vm2, %v1681_v1, -inf }
 0x10a   : > { %v2012_v17 = vsel %vm597_vm2, %v516_v2, -inf  ;;  %v2022_v19 = vsel %vm597_vm2, %v580_v3, -inf }
 0x10c   : > { %670 = vmax.xlane.f32.xlu0 %v1948_v4  ;;  %672 = vmax.xlane.f32.xlu1 %v1952_v5 }
 0x110   : > { %650 = vmax.xlane.f32.xlu0 %v1958_v6  ;;  %652 = vmax.xlane.f32.xlu1 %v1962_v7 }
 0x114   : > { %682 = vmax.xlane.f32.xlu0 %v1968_v8  ;;  %684 = vmax.xlane.f32.xlu1 %v1972_v9 }
 0x118   : > { %646 = vmax.xlane.f32.xlu0 %v1978_v10  ;;  %648 = vmax.xlane.f32.xlu1 %v1982_v11 }
 0x11c   : > { %678 = vmax.xlane.f32.xlu0 %v1988_v12  ;;  %680 = vmax.xlane.f32.xlu1 %v1992_v13 }
 0x120   : > { %658 = vmax.xlane.f32.xlu0 %v1998_v14  ;;  %660 = vmax.xlane.f32.xlu1 %v2002_v15 }
 0x124   : > { %654 = vmax.xlane.f32.xlu0 %v2008_v16  ;;  %656 = vmax.xlane.f32.xlu1 %v2012_v17 }
 0x128   : > { %686 = vmax.xlane.f32.xlu0 %v2018_v18  ;;  %688 = vmax.xlane.f32.xlu1 %v2022_v19 }
 0x12c   : > { %690 = vmax.xlane.f32.xlu0 %v2028_v20  ;;  %692 = vmax.xlane.f32.xlu1 %v2032_v22 }
 0x17d   : > { %v2040_v25 = vpop.xlane.xlu0 %666  ;;  %v2042_v28 = vpop.xlane.xlu1 %634 }
 0x17e   : > { %3240 = vst [vmem:[#allocation6_spill] sm:$0xff] %v2040_v25  ;;  %3241 = vst [vmem:[#allocation7_spill] sm:$0xff] %v2042_v28  ;;  %vm712_vm3 = vcmp.eq.f32.partialorder %v1878_v26, %v2040_v25  ;;  %vm1256_vm4 = vcmp.gt.f32.partialorder %v2040_v25, %v2036_v23  ;;  %vm696_vm5 = vcmp.eq.f32.partialorder %v1882_v27, %v2042_v28 }
 0x17f   : > { %vm1240_vm6 = vcmp.gt.f32.partialorder %v2042_v28, %v2038_v24  ;;  %v1288_v29 = vsel %vm1256_vm4, %v2040_v25, %v2036_v23  ;;  %v2067_v27 = vsel %vm696_vm5, %v1873_v21, 36  ;;  %v2070_v34 = vsel %vm712_vm3, %v1873_v21, 36 }
 0x180   : > { %v1272_v26 = vsel %vm1240_vm6, %v2042_v28, %v2038_v24  ;;  %1321 = vst.msk [vmem:[#allocation2 + $0x90] sm:$0xff] %vm181_vm1, %v1288_v29  ;;  %v787_v35 = vshra.s32 %v2067_v27, 16  ;;  %v1011_v40 = vshra.s32 %v2070_v34, 16 }
 0x181   : > { %1305 = vst.msk [vmem:[#allocation2 + $0x10] sm:$0xff] %vm181_vm1, %v1272_v26  ;;  %v2075_v38 = vpop.xlane.xlu0 %630  ;;  %v2077_v39 = vpop.xlane.xlu1 %636 }
 0x182   : > { %3244 = vst [vmem:[#allocation10_spill] sm:$0xff] %v2075_v38  ;;  %3245 = vst [vmem:[#allocation11_spill] sm:$0xff] %v2077_v39  ;;  %vm694_vm7 = vcmp.eq.f32.partialorder %v1888_v32, %v2075_v38  ;;  %vm1238_vm8 = vcmp.gt.f32.partialorder %v2075_v38, %v2062_v30  ;;  %vm697_vm9 = vcmp.eq.f32.partialorder %v1892_v33, %v2077_v39  ;;  %v2098_v42 = vcvt.s32.f32 %v787_v35  ;;  %v2102_v33 = vld [vmem:[#allocation2 + $0x98] sm:$0xff] }
 0x183   : > { %vm1241_vm10 = vcmp.gt.f32.partialorder %v2077_v39, %v2064_v31  ;;  %v1270_v41 = vsel %vm1238_vm8, %v2075_v38, %v2062_v30  ;;  %3247 = vst [vmem:[#allocation13_spill] sm:$0xff] %v2102_v33  ;;  %v2107_v48 = vsel %vm697_vm9, %v1873_v21, 36  ;;  %v2110_v49 = vsel %vm694_vm7, %v1873_v21, 36 }
 0x184   : > { %v1273_v32 = vsel %vm1241_vm10, %v2077_v39, %v2064_v31  ;;  %1303 = vst.msk [vmem:[#allocation2] sm:$0xff] %vm181_vm1, %v1270_v41  ;;  %790 = vmin.xlane.f32.xlu0 %v2098_v42  ;;  %v2117_v52 = vcvt.s32.f32 %v1011_v40  ;;  %v801_v53 = vshra.s32 %v2107_v48, 16  ;;  %v759_v59 = vshra.s32 %v2110_v49, 16  ;;  %v2185_v40 = vld [vmem:[#allocation2 + $0x38] sm:$0xff] }
 0x185   : > { %1306 = vst.msk [vmem:[#allocation2 + $0x18] sm:$0xff] %vm181_vm1, %v1273_v32  ;;  %v2113_v50 = vpop.xlane.xlu0 %662  ;;  %v2115_v51 = vpop.xlane.xlu1 %668  ;;  %3255 = vst [vmem:[#allocation21_spill] sm:$0xff] %v2185_v40 }
 0x186   : > { %3248 = vst [vmem:[#allocation14_spill] sm:$0xff] %v2113_v50  ;;  %3249 = vst [vmem:[#allocation15_spill] sm:$0xff] %v2115_v51  ;;  %vm710_vm11 = vcmp.eq.f32.partialorder %v1898_v36, %v2113_v50  ;;  %vm1254_vm12 = vcmp.gt.f32.partialorder %v2113_v50, %v2100_v43  ;;  %vm713_vm13 = vcmp.eq.f32.partialorder %v1902_v37, %v2115_v51  ;;  %v2138_v57 = vcvt.s32.f32 %v801_v53  ;;  %v2142_v37 = vld [vmem:[#allocation2 + $0x8] sm:$0xff] }
 0x187   : > { %vm1257_vm14 = vcmp.gt.f32.partialorder %v2115_v51, %v2102_v33  ;;  %v1286_v56 = vsel %vm1254_vm12, %v2113_v50, %v2100_v43  ;;  %3251 = vst [vmem:[#allocation17_spill] sm:$0xff] %v2142_v37  ;;  %v2148_v62 = vsel %vm713_vm13, %v1873_v21, 36  ;;  %v2151_v63 = vsel %vm710_vm11, %v1873_v21, 36 }
 0x188   : > { %v1289_v36 = vsel %vm1257_vm14, %v2115_v51, %v2102_v33  ;;  %1319 = vst.msk [vmem:[#allocation2 + $0x80] sm:$0xff] %vm181_vm1, %v1286_v56  ;;  %1014 = vmin.xlane.f32.xlu0 %v2117_v52  ;;  %804 = vmin.xlane.f32.xlu1 %v2138_v57  ;;  %v1025_v2 = vshra.s32 %v2148_v62, 16  ;;  %v983_v3 = vshra.s32 %v2151_v63, 16  ;;  %v2179_v26 = vcvt.s32.f32 %v759_v59 }
 0x189   : > { %1322 = vst.msk [vmem:[#allocation2 + $0x98] sm:$0xff] %vm181_vm1, %v1289_v36  ;;  %v2155_v0 = vpop.xlane.xlu1 %664  ;;  %v2157_v1 = vpop.xlane.xlu0 %632 }
 0x18a   : > { %3252 = vst [vmem:[#allocation18_spill] sm:$0xff] %v2155_v0  ;;  %3253 = vst [vmem:[#allocation19_spill] sm:$0xff] %v2157_v1  ;;  %vm711_vm15 = vcmp.eq.f32.partialorder %v1908_v44, %v2155_v0  ;;  %vm1255_vm0 = vcmp.gt.f32.partialorder %v2155_v0, %v2140_v58  ;;  %vm695_vm2 = vcmp.eq.f32.partialorder %v1912_v45, %v2157_v1  ;;  %v2181_v35 = vcvt.s32.f32 %v1025_v2  ;;  %v2183_v45 = vld [vmem:[#allocation2 + $0x30] sm:$0xff] }
 0x18b   : > { %vm1239_vm3 = vcmp.gt.f32.partialorder %v2157_v1, %v2142_v37  ;;  %v1287_v29 = vsel %vm1255_vm0, %v2155_v0, %v2140_v58  ;;  %3254 = vst [vmem:[#allocation20_spill] sm:$0xff] %v2183_v45  ;;  %v2190_v41 = vsel %vm695_vm2, %v1873_v21, 36  ;;  %v2193_v32 = vsel %vm711_vm15, %v1873_v21, 36 }
 0x18c   : > { %v1271_v44 = vsel %vm1239_vm3, %v2157_v1, %v2142_v37  ;;  %1320 = vst.msk [vmem:[#allocation2 + $0x88] sm:$0xff] %vm181_vm1, %v1287_v29  ;;  %762 = vmin.xlane.f32.xlu0 %v2179_v26  ;;  %1028 = vmin.xlane.f32.xlu1 %v2181_v35  ;;  %v2201_v36 = vcvt.s32.f32 %v983_v3  ;;  %v773_v59 = vshra.s32 %v2190_v41, 16  ;;  %v997_v2 = vshra.s32 %v2193_v32, 16 }
 0x18d   : > { %1304 = vst.msk [vmem:[#allocation2 + $0x8] sm:$0xff] %vm181_vm1, %v1271_v44  ;;  %v2197_v53 = vpop.xlane.xlu0 %642  ;;  %v2199_v56 = vpop.xlane.xlu1 %644  ;;  %v2225_v44 = vld [vmem:[#allocation2 + $0xb0] sm:$0xff] }
 0x18e   : > { %3256 = vst [vmem:[#allocation22_spill] sm:$0xff] %v2197_v53  ;;  %3257 = vst [vmem:[#allocation23_spill] sm:$0xff] %v2199_v56  ;;  %vm700_vm5 = vcmp.eq.f32.partialorder %v1918_v46, %v2197_v53  ;;  %vm1244_vm7 = vcmp.gt.f32.partialorder %v2197_v53, %v2183_v45  ;;  %vm701_vm9 = vcmp.eq.f32.partialorder %v1922_v47, %v2199_v56  ;;  %v2223_v29 = vcvt.s32.f32 %v773_v59  ;;  %v2227_v47 = vld [vmem:[#allocation2 + $0xb8] sm:$0xff] }
 0x18f   : > { %vm1245_vm11 = vcmp.gt.f32.partialorder %v2199_v56, %v2185_v40  ;;  %v1276_v3 = vsel %vm1244_vm7, %v2197_v53, %v2183_v45  ;;  %3258 = vst [vmem:[#allocation24_spill] sm:$0xff] %v2225_v44  ;;  %3259 = vst [vmem:[#allocation25_spill] sm:$0xff] %v2227_v47  ;;  %v2230_v58 = vsel %vm700_vm5, %v1873_v21, 36  ;;  %v2236_v45 = vsel %vm701_vm9, %v1873_v21, 36 }
 0x190   : > { %v1277_v46 = vsel %vm1245_vm11, %v2199_v56, %v2185_v40  ;;  %1309 = vst.msk [vmem:[#allocation2 + $0x30] sm:$0xff] %vm181_vm1, %v1276_v3  ;;  %v843_v0 = vshra.s32 %v2230_v58, 16  ;;  %986 = vmin.xlane.f32.xlu0 %v2201_v36  ;;  %776 = vmin.xlane.f32.xlu1 %v2223_v29  ;;  %v2244_v56 = vcvt.s32.f32 %v997_v2  ;;  %v857_v53 = vshra.s32 %v2236_v45, 16 }
 0x191   : > { %1310 = vst.msk [vmem:[#allocation2 + $0x38] sm:$0xff] %vm181_vm1, %v1277_v46  ;;  %v2240_v59 = vpop.xlane.xlu0 %674  ;;  %v2242_v40 = vpop.xlane.xlu1 %676  ;;  %v2267_v46 = vld [vmem:[#allocation2 + $0x20] sm:$0xff] }
 0x192   : > { %3260 = vst [vmem:[#allocation26_spill] sm:$0xff] %v2240_v59  ;;  %3261 = vst [vmem:[#allocation27_spill] sm:$0xff] %v2242_v40  ;;  %vm716_vm13 = vcmp.eq.f32.partialorder %v1928_v54, %v2240_v59  ;;  %vm1260_vm15 = vcmp.gt.f32.partialorder %v2240_v59, %v2225_v44  ;;  %vm717_vm2 = vcmp.eq.f32.partialorder %v1932_v55, %v2242_v40  ;;  %v2265_v3 = vcvt.s32.f32 %v843_v0  ;;  %v2269_v55 = vld [vmem:[#allocation2 + $0x28] sm:$0xff] }
 0x193   : > { %vm3154_vm5 = vcmp.gt.f32.partialorder %v2242_v40, %v2227_v47  ;;  %v1292_v2 = vsel %vm1260_vm15, %v2240_v59, %v2225_v44  ;;  %3262 = vst [vmem:[#allocation28_spill] sm:$0xff] %v2267_v46  ;;  %3263 = vst [vmem:[#allocation29_spill] sm:$0xff] %v2269_v55  ;;  %v2272_v37 = vsel %vm716_vm13, %v1873_v21, 36  ;;  %v2278_v59 = vsel %vm717_vm2, %v1873_v21, 36 }
 0x194   : > { %v1293_v54 = vsel %vm3154_vm5, %v2242_v40, %v2227_v47  ;;  %1325 = vst.msk [vmem:[#allocation2 + $0xb0] sm:$0xff] %vm181_vm1, %v1292_v2  ;;  %v1067_v44 = vshra.s32 %v2272_v37, 16  ;;  %846 = vmin.xlane.f32.xlu0 %v2265_v3  ;;  %1000 = vmin.xlane.f32.xlu1 %v2244_v56  ;;  %v2286_v40 = vcvt.s32.f32 %v857_v53  ;;  %v1081_v1 = vshra.s32 %v2278_v59, 16 }
 0x195   : > { %1326 = vst.msk [vmem:[#allocation2 + $0xb8] sm:$0xff] %vm181_vm1, %v1293_v54  ;;  %v2282_v0 = vpop.xlane.xlu0 %638  ;;  %v2284_v47 = vpop.xlane.xlu1 %640  ;;  %v2309_v54 = vld [vmem:[#allocation2 + $0xa0] sm:$0xff] }
 0x196   : > { %3264 = vst [vmem:[#allocation30_spill] sm:$0xff] %v2282_v0  ;;  %3265 = vst [vmem:[#allocation31_spill] sm:$0xff] %v2284_v47  ;;  %vm698_vm9 = vcmp.eq.f32.partialorder %v1938_v60, %v2282_v0  ;;  %vm3162_vm13 = vcmp.gt.f32.partialorder %v2282_v0, %v2267_v46  ;;  %vm699_vm2 = vcmp.eq.f32.partialorder %v1942_v61, %v2284_v47  ;;  %v2307_v2 = vcvt.s32.f32 %v1067_v44  ;;  %v2311_v61 = vld [vmem:[#allocation2 + $0xa8] sm:$0xff] }
 0x197   : > { %vm3161_vm5 = vcmp.gt.f32.partialorder %v2284_v47, %v2269_v55  ;;  %v1274_v53 = vsel %vm3162_vm13, %v2282_v0, %v2267_v46  ;;  %3266 = vst [vmem:[#allocation32_spill] sm:$0xff] %v2309_v54  ;;  %3267 = vst [vmem:[#allocation33_spill] sm:$0xff] %v2311_v61  ;;  %v2314_v43 = vsel %vm698_vm9, %v1873_v21, 36  ;;  %v2320_v0 = vsel %vm699_vm2, %v1873_v21, 36 }
 0x198   : > { %v1275_v60 = vsel %vm3161_vm5, %v2284_v47, %v2269_v55  ;;  %1307 = vst.msk [vmem:[#allocation2 + $0x20] sm:$0xff] %vm181_vm1, %v1274_v53  ;;  %v815_v46 = vshra.s32 %v2314_v43, 16  ;;  %1070 = vmin.xlane.f32.xlu0 %v2307_v2  ;;  %860 = vmin.xlane.f32.xlu1 %v2286_v40  ;;  %v2328_v47 = vcvt.s32.f32 %v1081_v1  ;;  %v829_v50 = vshra.s32 %v2320_v0, 16 }
 0x199   : > { %1308 = vst.msk [vmem:[#allocation2 + $0x28] sm:$0xff] %vm181_vm1, %v1275_v60  ;;  %v2324_v44 = vpop.xlane.xlu0 %670  ;;  %v2326_v55 = vpop.xlane.xlu1 %672  ;;  %v2351_v60 = vld [vmem:[#allocation2 + $0x50] sm:$0xff] }
 0x19a   : > { %3268 = vst [vmem:[#allocation34_spill] sm:$0xff] %v2324_v44  ;;  %3269 = vst [vmem:[#allocation35_spill] sm:$0xff] %v2326_v55  ;;  %vm714_vm9 = vcmp.eq.f32.partialorder %v1948_v4, %v2324_v44  ;;  %vm3170_vm5 = vcmp.gt.f32.partialorder %v2324_v44, %v2309_v54  ;;  %vm715_vm2 = vcmp.eq.f32.partialorder %v1952_v5, %v2326_v55  ;;  %v2349_v53 = vcvt.s32.f32 %v815_v46  ;;  %v2353_v5 = vld [vmem:[#allocation2 + $0x58] sm:$0xff] }
 0x19b   : > { %vm3169_vm13 = vcmp.gt.f32.partialorder %v2326_v55, %v2311_v61  ;;  %v1290_v1 = vsel %vm3170_vm5, %v2324_v44, %v2309_v54  ;;  %3270 = vst [vmem:[#allocation36_spill] sm:$0xff] %v2351_v60  ;;  %3271 = vst [vmem:[#allocation37_spill] sm:$0xff] %v2353_v5  ;;  %v2356_v33 = vsel %vm714_vm9, %v1873_v21, 36  ;;  %v2362_v44 = vsel %vm715_vm2, %v1873_v21, 36 }
 0x19c   : > { %v1291_v4 = vsel %vm3169_vm13, %v2326_v55, %v2311_v61  ;;  %1323 = vst.msk [vmem:[#allocation2 + $0xa0] sm:$0xff] %vm181_vm1, %v1290_v1  ;;  %v1039_v54 = vshra.s32 %v2356_v33, 16  ;;  %818 = vmin.xlane.f32.xlu0 %v2349_v53  ;;  %1084 = vmin.xlane.f32.xlu1 %v2328_v47  ;;  %v2370_v55 = vcvt.s32.f32 %v829_v50  ;;  %v1053_v51 = vshra.s32 %v2362_v44, 16 }
 0x19d   : > { %1324 = vst.msk [vmem:[#allocation2 + $0xa8] sm:$0xff] %vm181_vm1, %v1291_v4  ;;  %v2366_v46 = vpop.xlane.xlu0 %650  ;;  %v2368_v61 = vpop.xlane.xlu1 %652  ;;  %v2393_v4 = vld [vmem:[#allocation2 + $0xd0] sm:$0xff] }
 0x19e   : > { %3272 = vst [vmem:[#allocation38_spill] sm:$0xff] %v2366_v46  ;;  %3273 = vst [vmem:[#allocation39_spill] sm:$0xff] %v2368_v61  ;;  %vm704_vm9 = vcmp.eq.f32.partialorder %v1958_v6, %v2366_v46  ;;  %vm3178_vm13 = vcmp.gt.f32.partialorder %v2366_v46, %v2351_v60  ;;  %vm705_vm2 = vcmp.eq.f32.partialorder %v1962_v7, %v2368_v61  ;;  %v2391_v1 = vcvt.s32.f32 %v1039_v54  ;;  %v2395_v7 = vld [vmem:[#allocation2 + $0xd8] sm:$0xff] }
 0x19f   : > { %vm3177_vm5 = vcmp.gt.f32.partialorder %v2368_v61, %v2353_v5  ;;  %v1280_v50 = vsel %vm3178_vm13, %v2366_v46, %v2351_v60  ;;  %3274 = vst [vmem:[#allocation40_spill] sm:$0xff] %v2393_v4  ;;  %3275 = vst [vmem:[#allocation41_spill] sm:$0xff] %v2395_v7  ;;  %v2398_v30 = vsel %vm704_vm9, %v1873_v21, 36  ;;  %v2404_v46 = vsel %vm705_vm2, %v1873_v21, 36 }
 0x1a0   : > { %v1281_v6 = vsel %vm3177_vm5, %v2368_v61, %v2353_v5  ;;  %1313 = vst.msk [vmem:[#allocation2 + $0x50] sm:$0xff] %vm181_vm1, %v1280_v50  ;;  %v899_v60 = vshra.s32 %v2398_v30, 16  ;;  %1042 = vmin.xlane.f32.xlu0 %v2391_v1  ;;  %832 = vmin.xlane.f32.xlu1 %v2370_v55  ;;  %v2412_v61 = vcvt.s32.f32 %v1053_v51  ;;  %v913_v38 = vshra.s32 %v2404_v46, 16 }
 0x1a1   : > { %1314 = vst.msk [vmem:[#allocation2 + $0x58] sm:$0xff] %vm181_vm1, %v1281_v6  ;;  %v2408_v54 = vpop.xlane.xlu0 %682  ;;  %v2410_v5 = vpop.xlane.xlu1 %684  ;;  %v2435_v6 = vld [vmem:[#allocation2 + $0x40] sm:$0xff] }
 0x1a2   : > { %3276 = vst [vmem:[#allocation42_spill] sm:$0xff] %v2408_v54  ;;  %3277 = vst [vmem:[#allocation43_spill] sm:$0xff] %v2410_v5  ;;  %vm720_vm9 = vcmp.eq.f32.partialorder %v1968_v8, %v2408_v54  ;;  %vm3186_vm5 = vcmp.gt.f32.partialorder %v2408_v54, %v2393_v4  ;;  %vm721_vm2 = vcmp.eq.f32.partialorder %v1972_v9, %v2410_v5  ;;  %v2433_v50 = vcvt.s32.f32 %v899_v60  ;;  %v2437_v9 = vld [vmem:[#allocation2 + $0x48] sm:$0xff] }
 0x1a3   : > { %vm3185_vm13 = vcmp.gt.f32.partialorder %v2410_v5, %v2395_v7  ;;  %v1296_v51 = vsel %vm3186_vm5, %v2408_v54, %v2393_v4  ;;  %3278 = vst [vmem:[#allocation44_spill] sm:$0xff] %v2435_v6  ;;  %3279 = vst [vmem:[#allocation45_spill] sm:$0xff] %v2437_v9  ;;  %v2440_v31 = vsel %vm720_vm9, %v1873_v21, 36  ;;  %v2446_v54 = vsel %vm721_vm2, %v1873_v21, 36 }
 0x1a4   : > { %v1297_v8 = vsel %vm3185_vm13, %v2410_v5, %v2395_v7  ;;  %1329 = vst.msk [vmem:[#allocation2 + $0xd0] sm:$0xff] %vm181_vm1, %v1296_v51  ;;  %v1123_v4 = vshra.s32 %v2440_v31, 16  ;;  %902 = vmin.xlane.f32.xlu0 %v2433_v50  ;;  %1056 = vmin.xlane.f32.xlu1 %v2412_v61  ;;  %v2454_v5 = vcvt.s32.f32 %v913_v38  ;;  %v1137_v39 = vshra.s32 %v2446_v54, 16 }
 0x1a5   : > { %1330 = vst.msk [vmem:[#allocation2 + $0xd8] sm:$0xff] %vm181_vm1, %v1297_v8  ;;  %v2450_v60 = vpop.xlane.xlu0 %646  ;;  %v2452_v7 = vpop.xlane.xlu1 %648  ;;  %v2477_v8 = vld [vmem:[#allocation2 + $0xc0] sm:$0xff] }
 0x1a6   : > { %3280 = vst [vmem:[#allocation46_spill] sm:$0xff] %v2450_v60  ;;  %3281 = vst [vmem:[#allocation47_spill] sm:$0xff] %v2452_v7  ;;  %vm702_vm9 = vcmp.eq.f32.partialorder %v1978_v10, %v2450_v60  ;;  %vm3194_vm13 = vcmp.gt.f32.partialorder %v2450_v60, %v2435_v6  ;;  %vm703_vm2 = vcmp.eq.f32.partialorder %v1982_v11, %v2452_v7  ;;  %v2475_v51 = vcvt.s32.f32 %v1123_v4  ;;  %v2479_v11 = vld [vmem:[#allocation2 + $0xc8] sm:$0xff] }
 0x1a7   : > { %vm3193_vm5 = vcmp.gt.f32.partialorder %v2452_v7, %v2437_v9  ;;  %v1278_v38 = vsel %vm3194_vm13, %v2450_v60, %v2435_v6  ;;  %3282 = vst [vmem:[#allocation48_spill] sm:$0xff] %v2477_v8  ;;  %3283 = vst [vmem:[#allocation49_spill] sm:$0xff] %v2479_v11  ;;  %v2482_v23 = vsel %vm702_vm9, %v1873_v21, 36  ;;  %v2488_v60 = vsel %vm703_vm2, %v1873_v21, 36 }
 0x1a8   : > { %v1279_v10 = vsel %vm3193_vm5, %v2452_v7, %v2437_v9  ;;  %1311 = vst.msk [vmem:[#allocation2 + $0x40] sm:$0xff] %vm181_vm1, %v1278_v38  ;;  %v871_v6 = vshra.s32 %v2482_v23, 16  ;;  %1126 = vmin.xlane.f32.xlu0 %v2475_v51  ;;  %916 = vmin.xlane.f32.xlu1 %v2454_v5  ;;  %v2496_v7 = vcvt.s32.f32 %v1137_v39  ;;  %v885_v25 = vshra.s32 %v2488_v60, 16 }
 0x1a9   : > { %1312 = vst.msk [vmem:[#allocation2 + $0x48] sm:$0xff] %vm181_vm1, %v1279_v10  ;;  %v2492_v4 = vpop.xlane.xlu0 %678  ;;  %v2494_v9 = vpop.xlane.xlu1 %680  ;;  %v2519_v10 = vld [vmem:[#allocation2 + $0x70] sm:$0xff] }
 0x1aa   : > { %3284 = vst [vmem:[#allocation50_spill] sm:$0xff] %v2492_v4  ;;  %3285 = vst [vmem:[#allocation51_spill] sm:$0xff] %v2494_v9  ;;  %vm718_vm9 = vcmp.eq.f32.partialorder %v1988_v12, %v2492_v4  ;;  %vm3202_vm5 = vcmp.gt.f32.partialorder %v2492_v4, %v2477_v8  ;;  %vm719_vm2 = vcmp.eq.f32.partialorder %v1992_v13, %v2494_v9  ;;  %v2517_v38 = vcvt.s32.f32 %v871_v6  ;;  %v2521_v13 = vld [vmem:[#allocation2 + $0x78] sm:$0xff] }
 0x1ab   : > { %3286 = vst [vmem:[#allocation52_spill] sm:$0xff] %v2496_v7  ;;  %vm3201_vm13 = vcmp.gt.f32.partialorder %v2494_v9, %v2479_v11  ;;  %v1294_v39 = vsel %vm3202_vm5, %v2492_v4, %v2477_v8  ;;  %3287 = vst [vmem:[#allocation53_spill] sm:$0xff] %v2519_v10  ;;  %v2524_v24 = vsel %vm718_vm9, %v1873_v21, 36  ;;  %v2530_v4 = vsel %vm719_vm2, %v1873_v21, 36 }
 0x1ac   : > { %v1295_v12 = vsel %vm3201_vm13, %v2494_v9, %v2479_v11  ;;  %3288 = vst [vmem:[#allocation54_spill] sm:$0xff] %v2521_v13  ;;  %1327 = vst.msk [vmem:[#allocation2 + $0xc0] sm:$0xff] %vm181_vm1, %v1294_v39  ;;  %v1095_v8 = vshra.s32 %v2524_v24, 16  ;;  %874 = vmin.xlane.f32.xlu0 %v2517_v38  ;;  %1140 = vmin.xlane.f32.xlu1 %v2496_v7  ;;  %v2538_v9 = vcvt.s32.f32 %v885_v25  ;;  %v1109_v28 = vshra.s32 %v2530_v4, 16 }
 0x1ad   : > { %1328 = vst.msk [vmem:[#allocation2 + $0xc8] sm:$0xff] %vm181_vm1, %v1295_v12  ;;  %3289 = vst [vmem:[#allocation55_spill] sm:$0xff] %v2530_v4  ;;  %v2534_v6 = vpop.xlane.xlu0 %658  ;;  %v2536_v11 = vpop.xlane.xlu1 %660  ;;  %v2561_v12 = vld [vmem:[#allocation2 + $0x60] sm:$0xff] }
 0x1ae   : > { %3290 = vst [vmem:[#allocation56_spill] sm:$0xff] %v2534_v6  ;;  %3291 = vst [vmem:[#allocation57_spill] sm:$0xff] %v2536_v11  ;;  %vm708_vm9 = vcmp.eq.f32.partialorder %v1998_v14, %v2534_v6  ;;  %vm3210_vm13 = vcmp.gt.f32.partialorder %v2534_v6, %v2519_v10  ;;  %vm709_vm2 = vcmp.eq.f32.partialorder %v2002_v15, %v2536_v11  ;;  %v2559_v39 = vcvt.s32.f32 %v1095_v8  ;;  %v2563_v15 = vld [vmem:[#allocation2 + $0x68] sm:$0xff] }
 0x1af   : > { %3292 = vst [vmem:[#allocation58_spill] sm:$0xff] %v2538_v9  ;;  %vm3209_vm5 = vcmp.gt.f32.partialorder %v2536_v11, %v2521_v13  ;;  %v1284_v25 = vsel %vm3210_vm13, %v2534_v6, %v2519_v10  ;;  %3293 = vst [vmem:[#allocation59_spill] sm:$0xff] %v2561_v12  ;;  %v2566_v4 = vsel %vm708_vm9, %v1873_v21, 36  ;;  %v2572_v6 = vsel %vm709_vm2, %v1873_v21, 36 }
 0x1b0   : > { %v1285_v14 = vsel %vm3209_vm5, %v2536_v11, %v2521_v13  ;;  %3294 = vst [vmem:[#allocation60_spill] sm:$0xff] %v2563_v15  ;;  %1317 = vst.msk [vmem:[#allocation2 + $0x70] sm:$0xff] %vm181_vm1, %v1284_v25  ;;  %v955_v10 = vshra.s32 %v2566_v4, 16  ;;  %1098 = vmin.xlane.f32.xlu0 %v2559_v39  ;;  %888 = vmin.xlane.f32.xlu1 %v2538_v9  ;;  %v2580_v11 = vcvt.s32.f32 %v1109_v28  ;;  %v969_v7 = vshra.s32 %v2572_v6, 16 }
 0x1b1   : > { %1318 = vst.msk [vmem:[#allocation2 + $0x78] sm:$0xff] %vm181_vm1, %v1285_v14  ;;  %3295 = vst [vmem:[#allocation61_spill] sm:$0xff] %v2572_v6  ;;  %v2576_v8 = vpop.xlane.xlu0 %654  ;;  %v2578_v13 = vpop.xlane.xlu1 %656  ;;  %v2603_v14 = vld [vmem:[#allocation2 + $0xe0] sm:$0xff] }
 0x1b2   : > { %3296 = vst [vmem:[#allocation62_spill] sm:$0xff] %v2576_v8  ;;  %3297 = vst [vmem:[#allocation63_spill] sm:$0xff] %v2578_v13  ;;  %vm706_vm9 = vcmp.eq.f32.partialorder %v2008_v16, %v2576_v8  ;;  %vm3218_vm5 = vcmp.gt.f32.partialorder %v2576_v8, %v2561_v12  ;;  %vm707_vm2 = vcmp.eq.f32.partialorder %v2012_v17, %v2578_v13  ;;  %v2601_v25 = vcvt.s32.f32 %v955_v10  ;;  %v2605_v17 = vld [vmem:[#allocation2 + $0xe8] sm:$0xff] }
 0x1b3   : > { %3298 = vst [vmem:[#allocation64_spill] sm:$0xff] %v2580_v11  ;;  %vm3217_vm13 = vcmp.gt.f32.partialorder %v2578_v13, %v2563_v15  ;;  %v1282_v28 = vsel %vm3218_vm5, %v2576_v8, %v2561_v12  ;;  %3299 = vst [vmem:[#allocation65_spill] sm:$0xff] %v2603_v14  ;;  %v2608_v6 = vsel %vm706_vm9, %v1873_v21, 36  ;;  %v2614_v8 = vsel %vm707_vm2, %v1873_v21, 36 }
 0x1b4   : > { %v1283_v16 = vsel %vm3217_vm13, %v2578_v13, %v2563_v15  ;;  %3300 = vst [vmem:[#allocation66_spill] sm:$0xff] %v2605_v17  ;;  %1315 = vst.msk [vmem:[#allocation2 + $0x60] sm:$0xff] %vm181_vm1, %v1282_v28  ;;  %v927_v12 = vshra.s32 %v2608_v6, 16  ;;  %958 = vmin.xlane.f32.xlu0 %v2601_v25  ;;  %1112 = vmin.xlane.f32.xlu1 %v2580_v11  ;;  %v2622_v13 = vcvt.s32.f32 %v969_v7  ;;  %v941_v9 = vshra.s32 %v2614_v8, 16 }
 0x1b5   : > { %1316 = vst.msk [vmem:[#allocation2 + $0x68] sm:$0xff] %vm181_vm1, %v1283_v16  ;;  %3301 = vst [vmem:[#allocation67_spill] sm:$0xff] %v2614_v8  ;;  %v2618_v10 = vpop.xlane.xlu0 %686  ;;  %v2620_v15 = vpop.xlane.xlu1 %688  ;;  %v2645_v16 = vld [vmem:[#allocation2 + $0xf0] sm:$0xff] }
 0x1b6   : > { %3302 = vst [vmem:[#allocation68_spill] sm:$0xff] %v2618_v10  ;;  %3303 = vst [vmem:[#allocation69_spill] sm:$0xff] %v2620_v15  ;;  %vm722_vm9 = vcmp.eq.f32.partialorder %v2018_v18, %v2618_v10  ;;  %vm3226_vm13 = vcmp.gt.f32.partialorder %v2618_v10, %v2603_v14  ;;  %vm723_vm2 = vcmp.eq.f32.partialorder %v2022_v19, %v2620_v15  ;;  %v2643_v28 = vcvt.s32.f32 %v927_v12  ;;  %v2647_v19 = vld [vmem:[#allocation2 + $0xf8] sm:$0xff] }
 0x1b7   : > { %vm3225_vm5 = vcmp.gt.f32.partialorder %v2620_v15, %v2605_v17  ;;  %v1298_v7 = vsel %vm3226_vm13, %v2618_v10, %v2603_v14  ;;  %3304 = vst [vmem:[#allocation70_spill] sm:$0xff] %v2645_v16  ;;  %3305 = vst [vmem:[#allocation71_spill] sm:$0xff] %v2647_v19  ;;  %v2650_v8 = vsel %vm722_vm9, %v1873_v21, 36  ;;  %v2656_v10 = vsel %vm723_vm2, %v1873_v21, 36 }
 0x1b8   : > { %v1299_v18 = vsel %vm3225_vm5, %v2620_v15, %v2605_v17  ;;  %1331 = vst.msk [vmem:[#allocation2 + $0xe0] sm:$0xff] %vm181_vm1, %v1298_v7  ;;  %v1151_v14 = vshra.s32 %v2650_v8, 16  ;;  %3306 = vst [vmem:[#allocation72_spill] sm:$0xff] %v2656_v10  ;;  %930 = vmin.xlane.f32.xlu0 %v2643_v28  ;;  %972 = vmin.xlane.f32.xlu1 %v2622_v13  ;;  %v2664_v15 = vcvt.s32.f32 %v941_v9  ;;  %v1165_v11 = vshra.s32 %v2656_v10, 16 }
 0x1b9   : > { %1332 = vst.msk [vmem:[#allocation2 + $0xe8] sm:$0xff] %vm181_vm1, %v1299_v18  ;;  %v2660_v12 = vpop.xlane.xlu0 %690  ;;  %v2662_v17 = vpop.xlane.xlu1 %692 }
 0x1ba   : > { %3307 = vst [vmem:[#allocation73_spill] sm:$0xff] %v2660_v12  ;;  %3308 = vst [vmem:[#allocation74_spill] sm:$0xff] %v2662_v17  ;;  %vm724_vm9 = vcmp.eq.f32.partialorder %v2028_v20, %v2660_v12  ;;  %vm3237_vm5 = vcmp.gt.f32.partialorder %v2660_v12, %v2645_v16  ;;  %vm725_vm2 = vcmp.eq.f32.partialorder %v2032_v22, %v2662_v17  ;;  %v2685_v7 = vcvt.s32.f32 %v1151_v14 }
 0x1bb   : > { %vm3236_vm13 = vcmp.gt.f32.partialorder %v2662_v17, %v2647_v19  ;;  %v1300_v9 = vsel %vm3237_vm5, %v2660_v12, %v2645_v16  ;;  %v2688_v18 = vsel %vm724_vm9, %v1873_v21, 36  ;;  %v2694_v10 = vsel %vm725_vm2, %v1873_v21, 36 }
 0x1bc   : > { %v1301_v20 = vsel %vm3236_vm13, %v2662_v17, %v2647_v19  ;;  %1333 = vst.msk [vmem:[#allocation2 + $0xf0] sm:$0xff] %vm181_vm1, %v1300_v9  ;;  %v1179_v22 = vshra.s32 %v2688_v18, 16  ;;  %3309 = vst [vmem:[#allocation75_spill] sm:$0xff] %v2694_v10  ;;  %1154 = vmin.xlane.f32.xlu0 %v2685_v7  ;;  %944 = vmin.xlane.f32.xlu1 %v2664_v15  ;;  %v2700_v14 = vcvt.s32.f32 %v1165_v11  ;;  %v1193_v19 = vshra.s32 %v2694_v10, 16 }
 0x1bd   : > { %1334 = vst.msk [vmem:[#allocation2 + $0xf8] sm:$0xff] %vm181_vm1, %v1301_v20  ;;  %v1758_v21 = vmov 0   ;;  %v786_v11 = vand.u32 65535, %v2067_v27  ;;  %v800_v17 = vand.u32 65535, %v2107_v48  ;;  %v758_v27 = vand.u32 65535, %v2110_v49 }
 0x1be   : > { %v2698_v16 = vcvt.s32.f32 %v1179_v22  ;;  %3311 = vst [vmem:[#allocation77_spill] sm:$0xff] %v2700_v14  ;;  %v2705_v9 = vcvt.s32.f32 %v1193_v19  ;;  %216 = vst.msk [vmem:[#allocation3 + $0x10] sm:$0xff] %vm181_vm1, %v1758_v21  ;;  %v1010_v22 = vand.u32 65535, %v2070_v34  ;;  %v1024_v10 = vand.u32 65535, %v2148_v62 }
 0x1bf   : > { %214 = vst.msk [vmem:[#allocation3] sm:$0xff] %vm181_vm1, %v1758_v21  ;;  %215 = vst.msk [vmem:[#allocation3 + $0x8] sm:$0xff] %vm181_vm1, %v1758_v21  ;;  %v788_v20 = vcvt.s32.f32 %v786_v11  ;;  %v760_v11 = vcvt.s32.f32 %v758_v27  ;;  %v982_v49 = vand.u32 65535, %v2151_v63  ;;  %v772_v62 = vand.u32 65535, %v2190_v41 }
 0x1c0   : > { %3310 = vst [vmem:[#allocation76_spill] sm:$0xff] %v2698_v16  ;;  %1182 = vmin.xlane.f32.xlu0 %v2698_v16  ;;  %1168 = vmin.xlane.f32.xlu1 %v2700_v14  ;;  %3312 = vst [vmem:[#allocation78_spill] sm:$0xff] %v2705_v9  ;;  %v1012_v16 = vcvt.s32.f32 %v1010_v22  ;;  %v842_v63 = vand.u32 65535, %v2230_v58  ;;  %v996_v41 = vand.u32 65535, %v2193_v32  ;;  %v1066_v58 = vand.u32 65535, %v2272_v37 }
 0x1c1   : > { %217 = vst.msk [vmem:[#allocation3 + $0x18] sm:$0xff] %vm181_vm1, %v1758_v21  ;;  %218 = vst.msk [vmem:[#allocation3 + $0x20] sm:$0xff] %vm181_vm1, %v1758_v21  ;;  %v984_v22 = vcvt.s32.f32 %v982_v49  ;;  %v856_v32 = vand.u32 65535, %v2236_v45  ;;  %v814_v37 = vand.u32 65535, %v2314_v43  ;;  %v1080_v45 = vand.u32 65535, %v2278_v59 }
 0x1c2   : > { %219 = vst.msk [vmem:[#allocation3 + $0x28] sm:$0xff] %vm181_vm1, %v1758_v21  ;;  %220 = vst.msk [vmem:[#allocation3 + $0x30] sm:$0xff] %vm181_vm1, %v1758_v21  ;;  %v1068_v49 = vcvt.s32.f32 %v1066_v58  ;;  %v1038_v43 = vand.u32 65535, %v2356_v33  ;;  %v828_v59 = vand.u32 65535, %v2320_v0  ;;  %v898_v33 = vand.u32 65535, %v2398_v30 }
 0x1c3   : > { %221 = vst.msk [vmem:[#allocation3 + $0x38] sm:$0xff] %vm181_vm1, %v1758_v21  ;;  %222 = vst.msk [vmem:[#allocation3 + $0x40] sm:$0xff] %vm181_vm1, %v1758_v21  ;;  %v1052_v0 = vand.u32 65535, %v2362_v44  ;;  %v1122_v30 = vand.u32 65535, %v2440_v31  ;;  %v912_v44 = vand.u32 65535, %v2404_v46  ;;  %v870_v31 = vand.u32 65535, %v2482_v23 }
 0x1c4   : > { %1196 = vmin.xlane.f32.xlu1 %v2705_v9  ;;  %223 = vst.msk [vmem:[#allocation3 + $0x48] sm:$0xff] %vm181_vm1, %v1758_v21  ;;  %224 = vst.msk [vmem:[#allocation3 + $0x50] sm:$0xff] %vm181_vm1, %v1758_v21  ;;  %v900_v58 = vcvt.s32.f32 %v898_v33  ;;  %v1136_v46 = vand.u32 65535, %v2446_v54  ;;  %v1094_v23 = vand.u32 65535, %v2524_v24  ;;  %v884_v54 = vand.u32 65535, %v2488_v60 }
 0x1c5   : > { %225 = vst.msk [vmem:[#allocation3 + $0x58] sm:$0xff] %vm181_vm1, %v1758_v21  ;;  %226 = vst.msk [vmem:[#allocation3 + $0x60] sm:$0xff] %vm181_vm1, %v1758_v21  ;;  %v954_v24 = vand.u32 65535, %v2566_v4  ;;  %v926_v4 = vand.u32 65535, %v2608_v6  ;;  %v1150_v6 = vand.u32 65535, %v2650_v8  ;;  %v1178_v8 = vand.u32 65535, %v2688_v18 }
 0x1c6   : > { %227 = vst.msk [vmem:[#allocation3 + $0x68] sm:$0xff] %vm181_vm1, %v1758_v21  ;;  %228 = vst.msk [vmem:[#allocation3 + $0x70] sm:$0xff] %vm181_vm1, %v1758_v21 }
 0x1c7   : > { %229 = vst.msk [vmem:[#allocation3 + $0x78] sm:$0xff] %vm181_vm1, %v1758_v21  ;;  %230 = vst.msk [vmem:[#allocation3 + $0x80] sm:$0xff] %vm181_vm1, %v1758_v21 }
 0x1c8   : > { %231 = vst.msk [vmem:[#allocation3 + $0x88] sm:$0xff] %vm181_vm1, %v1758_v21  ;;  %232 = vst.msk [vmem:[#allocation3 + $0x90] sm:$0xff] %vm181_vm1, %v1758_v21 }
 0x1c9   : > { %233 = vst.msk [vmem:[#allocation3 + $0x98] sm:$0xff] %vm181_vm1, %v1758_v21  ;;  %234 = vst.msk [vmem:[#allocation3 + $0xa0] sm:$0xff] %vm181_vm1, %v1758_v21 }
 0x1ca   : > { %235 = vst.msk [vmem:[#allocation3 + $0xa8] sm:$0xff] %vm181_vm1, %v1758_v21  ;;  %236 = vst.msk [vmem:[#allocation3 + $0xb0] sm:$0xff] %vm181_vm1, %v1758_v21 }
 0x1cb   : > { %237 = vst.msk [vmem:[#allocation3 + $0xb8] sm:$0xff] %vm181_vm1, %v1758_v21  ;;  %238 = vst.msk [vmem:[#allocation3 + $0xc0] sm:$0xff] %vm181_vm1, %v1758_v21 }
 0x1cc   : > { %239 = vst.msk [vmem:[#allocation3 + $0xc8] sm:$0xff] %vm181_vm1, %v1758_v21  ;;  %240 = vst.msk [vmem:[#allocation3 + $0xd0] sm:$0xff] %vm181_vm1, %v1758_v21 }
 0x1cd   : > { %241 = vst.msk [vmem:[#allocation3 + $0xd8] sm:$0xff] %vm181_vm1, %v1758_v21  ;;  %242 = vst.msk [vmem:[#allocation3 + $0xe0] sm:$0xff] %vm181_vm1, %v1758_v21 }
 0x1ce   : > { %243 = vst.msk [vmem:[#allocation3 + $0xe8] sm:$0xff] %vm181_vm1, %v1758_v21  ;;  %244 = vst.msk [vmem:[#allocation3 + $0xf0] sm:$0xff] %vm181_vm1, %v1758_v21 }
 0x1cf   : > { %245 = vst.msk [vmem:[#allocation3 + $0xf8] sm:$0xff] %vm181_vm1, %v1758_v21  ;;  %v802_v21 = vcvt.s32.f32 %v800_v17  ;;  %v1026_v17 = vcvt.s32.f32 %v1024_v10  ;;  %v774_v10 = vcvt.s32.f32 %v772_v62  ;;  %v858_v62 = vcvt.s32.f32 %v856_v32 }
 0x1d0   : > { %v1054_v32 = vcvt.s32.f32 %v1052_v0 }
 0x211   : > { %v2741_v19 = vpop.xlane.xlu0 %790 }
 0x212   : > { %vm792_vm9 = vcmp.eq.f32.partialorder %v2098_v42, %v2741_v19 }
 0x213   : > { %v793_v12 = vsel %vm792_vm9, %v788_v20, inf }
 0x214   : > { %794 = vmin.xlane.f32.xlu0 %v793_v12 }
 0x215   : > { %v2747_v9 = vpop.xlane.xlu0 %1014  ;;  %v2749_v14 = vpop.xlane.xlu1 %804 }
 0x216   : > { %vm1016_vm2 = vcmp.eq.f32.partialorder %v2117_v52, %v2747_v9  ;;  %vm806_vm13 = vcmp.eq.f32.partialorder %v2138_v57, %v2749_v14 }
 0x217   : > { %v1017_v34 = vsel %vm1016_vm2, %v1012_v16, inf  ;;  %v807_v42 = vsel %vm806_vm13, %v802_v21, inf }
 0x218   : > { %1018 = vmin.xlane.f32.xlu0 %v1017_v34  ;;  %808 = vmin.xlane.f32.xlu1 %v807_v42  ;;  %v844_v34 = vcvt.s32.f32 %v842_v63  ;;  %v998_v42 = vcvt.s32.f32 %v996_v41 }
 0x219   : > { %v2757_v48 = vpop.xlane.xlu0 %762  ;;  %v2759_v12 = vpop.xlane.xlu1 %1028 }
 0x21a   : > { %vm764_vm9 = vcmp.eq.f32.partialorder %v2179_v26, %v2757_v48  ;;  %vm1030_vm5 = vcmp.eq.f32.partialorder %v2181_v35, %v2759_v12 }
 0x21b   : > { %v765_v52 = vsel %vm764_vm9, %v760_v11, inf  ;;  %v1031_v57 = vsel %vm1030_vm5, %v1026_v17, inf }
 0x21c   : > { %766 = vmin.xlane.f32.xlu0 %v765_v52  ;;  %1032 = vmin.xlane.f32.xlu1 %v1031_v57 }
 0x21d   : > { %v2767_v16 = vpop.xlane.xlu0 %986  ;;  %v2769_v20 = vpop.xlane.xlu1 %776 }
 0x21e   : > { %vm988_vm13 = vcmp.eq.f32.partialorder %v2201_v36, %v2767_v16  ;;  %vm778_vm2 = vcmp.eq.f32.partialorder %v2223_v29, %v2769_v20 }
 0x21f   : > { %v989_v26 = vsel %vm988_vm13, %v984_v22, inf  ;;  %v779_v35 = vsel %vm778_vm2, %v774_v10, inf  ;;  %v816_v22 = vcvt.s32.f32 %v814_v37  ;;  %v1082_v10 = vcvt.s32.f32 %v1080_v45 }
 0x220   : > { %990 = vmin.xlane.f32.xlu0 %v989_v26  ;;  %780 = vmin.xlane.f32.xlu1 %v779_v35  ;;  %v1040_v26 = vcvt.s32.f32 %v1038_v43  ;;  %v830_v35 = vcvt.s32.f32 %v828_v59  ;;  %v1096_v59 = vcvt.s32.f32 %v1094_v23 }
 0x221   : > { %v2777_v21 = vpop.xlane.xlu0 %846  ;;  %v2779_v27 = vpop.xlane.xlu1 %1000 }
 0x222   : > { %vm848_vm5 = vcmp.eq.f32.partialorder %v2265_v3, %v2777_v21  ;;  %vm1002_vm9 = vcmp.eq.f32.partialorder %v2244_v56, %v2779_v27 }
 0x223   : > { %v849_v36 = vsel %vm848_vm5, %v844_v34, inf  ;;  %v1003_v29 = vsel %vm1002_vm9, %v998_v42, inf }
 0x224   : > { %850 = vmin.xlane.f32.xlu0 %v849_v36  ;;  %1004 = vmin.xlane.f32.xlu1 %v1003_v29 }
 0x225   : > { %v2787_v11 = vpop.xlane.xlu0 %1070  ;;  %v2789_v17 = vpop.xlane.xlu1 %860 }
 0x226   : > { %vm1072_vm13 = vcmp.eq.f32.partialorder %v2307_v2, %v2787_v11  ;;  %vm862_vm2 = vcmp.eq.f32.partialorder %v2286_v40, %v2789_v17 }
 0x227   : > { %v1073_v56 = vsel %vm1072_vm13, %v1068_v49, inf  ;;  %v863_v3 = vsel %vm862_vm2, %v858_v62, inf  ;;  %v1124_v49 = vcvt.s32.f32 %v1122_v30  ;;  %v914_v62 = vcvt.s32.f32 %v912_v44 }
 0x228   : > { %1074 = vmin.xlane.f32.xlu0 %v1073_v56  ;;  %864 = vmin.xlane.f32.xlu1 %v863_v3  ;;  %v872_v56 = vcvt.s32.f32 %v870_v31  ;;  %v1138_v3 = vcvt.s32.f32 %v1136_v46  ;;  %v3318_v31 = vld [vmem:[#allocation67_spill] sm:$0xff] }
 0x229   : > { %v2797_v52 = vpop.xlane.xlu0 %818  ;;  %v2799_v57 = vpop.xlane.xlu1 %1084  ;;  %v940_v46 = vand.u32 65535, %v3318_v31  ;;  %v1035_v31 = vcvt.f32.s32 %v2759_v12  ;;  %v993_v12 = vcvt.f32.s32 %v2767_v16  ;;  %v1354_v16 = vld [vmem:[#allocation3 + $0x98] sm:$0xff] }
 0x22a   : > { %vm820_vm5 = vcmp.eq.f32.partialorder %v2349_v53, %v2797_v52  ;;  %vm1086_vm9 = vcmp.eq.f32.partialorder %v2328_v47, %v2799_v57 }
 0x22b   : > { %v821_v40 = vsel %vm820_vm5, %v816_v22, inf  ;;  %v1087_v2 = vsel %vm1086_vm9, %v1082_v10, inf  ;;  %v942_v23 = vcvt.s32.f32 %v940_v46 }
 0x22c   : > { %822 = vmin.xlane.f32.xlu0 %v821_v40  ;;  %1088 = vmin.xlane.f32.xlu1 %v1087_v2  ;;  %v886_v40 = vcvt.s32.f32 %v884_v54  ;;  %v3314_v2 = vld [vmem:[#allocation55_spill] sm:$0xff]  ;;  %v3319_v54 = vld [vmem:[#allocation72_spill] sm:$0xff] }
 0x22d   : > { %v2807_v63 = vpop.xlane.xlu0 %1042  ;;  %v2809_v41 = vpop.xlane.xlu1 %832  ;;  %v1108_v60 = vand.u32 65535, %v3314_v2  ;;  %v3321_v2 = vld [vmem:[#allocation76_spill] sm:$0xff] }
 0x22e   : > { %vm1044_vm13 = vcmp.eq.f32.partialorder %v2391_v1, %v2807_v63  ;;  %vm834_vm2 = vcmp.eq.f32.partialorder %v2370_v55, %v2809_v41 }
 0x22f   : > { %v1045_v47 = vsel %vm1044_vm13, %v1040_v26, inf  ;;  %v835_v53 = vsel %vm834_vm2, %v830_v35, inf }
 0x230   : > { %1046 = vmin.xlane.f32.xlu0 %v1045_v47  ;;  %836 = vmin.xlane.f32.xlu1 %v835_v53  ;;  %v956_v47 = vcvt.s32.f32 %v954_v24  ;;  %v1110_v53 = vcvt.s32.f32 %v1108_v60  ;;  %v3320_v24 = vld [vmem:[#allocation75_spill] sm:$0xff] }
 0x231   : > { %v2817_v34 = vpop.xlane.xlu0 %902  ;;  %v2819_v42 = vpop.xlane.xlu1 %1056  ;;  %v1192_v18 = vand.u32 65535, %v3320_v24 }
 0x232   : > { %vm904_vm5 = vcmp.eq.f32.partialorder %v2433_v50, %v2817_v34  ;;  %vm1058_vm9 = vcmp.eq.f32.partialorder %v2412_v61, %v2819_v42 }
 0x233   : > { %v905_v55 = vsel %vm904_vm5, %v900_v58, inf  ;;  %v1059_v1 = vsel %vm1058_vm9, %v1054_v32, inf  ;;  %v3316_v58 = vld [vmem:[#allocation61_spill] sm:$0xff] }
 0x234   : > { %906 = vmin.xlane.f32.xlu0 %v905_v55  ;;  %1060 = vmin.xlane.f32.xlu1 %v1059_v1  ;;  %v968_v32 = vand.u32 65535, %v3316_v58 }
 0x235   : > { %v2827_v36 = vpop.xlane.xlu0 %1126  ;;  %v2829_v29 = vpop.xlane.xlu1 %916 }
 0x236   : > { %vm1128_vm13 = vcmp.eq.f32.partialorder %v2475_v51, %v2827_v36  ;;  %vm918_vm2 = vcmp.eq.f32.partialorder %v2454_v5, %v2829_v29  ;;  %v3313_v51 = vld [vmem:[#allocation52_spill] sm:$0xff] }
 0x237   : > { %v1129_v61 = vsel %vm1128_vm13, %v1124_v49, inf  ;;  %v919_v50 = vsel %vm918_vm2, %v914_v62, inf  ;;  %v928_v49 = vcvt.s32.f32 %v926_v4  ;;  %v970_v62 = vcvt.s32.f32 %v968_v32 }
 0x238   : > { %1130 = vmin.xlane.f32.xlu0 %v1129_v61  ;;  %920 = vmin.xlane.f32.xlu1 %v919_v50  ;;  %v1021_v4 = vcvt.f32.s32 %v2747_v9 }
 0x239   : > { %v2837_v37 = vpop.xlane.xlu0 %874  ;;  %v2839_v45 = vpop.xlane.xlu1 %1140 }
 0x23a   : > { %vm876_vm5 = vcmp.eq.f32.partialorder %v2517_v38, %v2837_v37  ;;  %vm1142_vm9 = vcmp.eq.f32.partialorder %v3313_v51, %v2839_v45  ;;  %v3315_v38 = vld [vmem:[#allocation58_spill] sm:$0xff]  ;;  %v1164_v51 = vand.u32 65535, %v3319_v54  ;;  %v1338_v54 = vld [vmem:[#allocation3 + $0x18] sm:$0xff] }
 0x23b   : > { %v877_v5 = vsel %vm876_vm5, %v872_v56, inf  ;;  %v1143_v22 = vsel %vm1142_vm9, %v1138_v3, inf  ;;  %v1152_v3 = vcvt.s32.f32 %v1150_v6  ;;  %v769_v6 = vcvt.f32.s32 %v2757_v48 }
 0x23c   : > { %878 = vmin.xlane.f32.xlu0 %v877_v5  ;;  %1144 = vmin.xlane.f32.xlu1 %v1143_v22  ;;  %v1036_v48 = vshll.u32 %v1035_v31, 16 }
 0x23d   : > { %v2847_v10 = vpop.xlane.xlu0 %1098  ;;  %v2849_v43 = vpop.xlane.xlu1 %888 }
 0x23e   : > { %vm1100_vm13 = vcmp.eq.f32.partialorder %v2559_v39, %v2847_v10  ;;  %vm890_vm2 = vcmp.eq.f32.partialorder %v3315_v38, %v2849_v43  ;;  %v3317_v39 = vld [vmem:[#allocation64_spill] sm:$0xff] }
 0x23f   : > { %v1101_v26 = vsel %vm1100_vm13, %v1096_v59, inf  ;;  %v891_v35 = vsel %vm890_vm2, %v886_v40, inf  ;;  %v1180_v59 = vcvt.s32.f32 %v1178_v8  ;;  %v1166_v40 = vcvt.s32.f32 %v1164_v51 }
 0x240   : > { %1102 = vmin.xlane.f32.xlu0 %v1101_v26  ;;  %892 = vmin.xlane.f32.xlu1 %v891_v35  ;;  %v1194_v26 = vcvt.s32.f32 %v1192_v18  ;;  %v3323_v35 = vld [vmem:[#allocation78_spill] sm:$0xff] }
 0x241   : > { %v2857_v33 = vpop.xlane.xlu0 %958  ;;  %v2859_v0 = vpop.xlane.xlu1 %1112 }
 0x242   : > { %vm960_vm5 = vcmp.eq.f32.partialorder %v2601_v25, %v2857_v33  ;;  %vm1114_vm9 = vcmp.eq.f32.partialorder %v3317_v39, %v2859_v0  ;;  %v811_v39 = vcvt.f32.s32 %v2749_v14  ;;  %v1353_v14 = vld [vmem:[#allocation3 + $0x90] sm:$0xff] }
 0x243   : > { %v961_v30 = vsel %vm960_vm5, %v956_v47, inf  ;;  %v1115_v44 = vsel %vm1114_vm9, %v1110_v53, inf  ;;  %v797_v53 = vcvt.f32.s32 %v2741_v19 }
 0x244   : > { %962 = vmin.xlane.f32.xlu0 %v961_v30  ;;  %1116 = vmin.xlane.f32.xlu1 %v1115_v44  ;;  %v1337_v44 = vld [vmem:[#allocation3 + $0x10] sm:$0xff] }
 0x245   : > { %v2867_v55 = vpop.xlane.xlu0 %930  ;;  %v2869_v1 = vpop.xlane.xlu1 %972  ;;  %v798_v32 = vshll.u32 %v797_v53, 16  ;;  %v1335_v53 = vld [vmem:[#allocation3] sm:$0xff] }
 0x246   : > { %vm932_vm13 = vcmp.eq.f32.partialorder %v2643_v28, %v2867_v55  ;;  %vm974_vm2 = vcmp.eq.f32.partialorder %v2622_v13, %v2869_v1 }
 0x247   : > { %v933_v25 = vsel %vm932_vm13, %v928_v49, inf  ;;  %v975_v61 = vsel %vm974_vm2, %v970_v62, inf  ;;  %v1022_v62 = vshll.u32 %v1021_v4, 16 }
 0x248   : > { %934 = vmin.xlane.f32.xlu0 %v933_v25  ;;  %976 = vmin.xlane.f32.xlu1 %v975_v61  ;;  %v812_v61 = vshll.u32 %v811_v39, 16  ;;  %v853_v39 = vcvt.f32.s32 %v2777_v21  ;;  %v1351_v21 = vld [vmem:[#allocation3 + $0x80] sm:$0xff] }
 0x249   : > { %v2877_v50 = vpop.xlane.xlu0 %1154  ;;  %v2879_v56 = vpop.xlane.xlu1 %944 }
 0x24a   : > { %vm1156_vm5 = vcmp.eq.f32.partialorder %v2685_v7, %v2877_v50  ;;  %vm946_vm9 = vcmp.eq.f32.partialorder %v2664_v15, %v2879_v56  ;;  %v3322_v7 = vld [vmem:[#allocation77_spill] sm:$0xff] }
 0x24b   : > { %v1157_v13 = vsel %vm1156_vm5, %v1152_v3, inf  ;;  %v947_v28 = vsel %vm946_vm9, %v942_v23, inf }
 0x24c   : > { %1158 = vmin.xlane.f32.xlu0 %v1157_v13  ;;  %948 = vmin.xlane.f32.xlu1 %v947_v28  ;;  %v770_v28 = vshll.u32 %v769_v6, 16 }
 0x24d   : > { %v2887_v5 = vpop.xlane.xlu0 %1182  ;;  %v2889_v22 = vpop.xlane.xlu1 %1168 }
 0x24e   : > { %vm1184_vm13 = vcmp.eq.f32.partialorder %v3321_v2, %v2887_v5  ;;  %vm1170_vm2 = vcmp.eq.f32.partialorder %v3322_v7, %v2889_v22 }
 0x24f   : > { %v1185_v60 = vsel %vm1184_vm13, %v1180_v59, inf  ;;  %v1171_v15 = vsel %vm1170_vm2, %v1166_v40, inf  ;;  %v783_v59 = vcvt.f32.s32 %v2769_v20 }
 0x250   : > { %1186 = vmin.xlane.f32.xlu0 %v1185_v60  ;;  %1172 = vmin.xlane.f32.xlu1 %v1171_v15 }
 0x251   : > { %v2896_v38 = vpop.xlane.xlu1 %1196 }
 0x252   : > { %vm1198_vm5 = vcmp.eq.f32.partialorder %v3323_v35, %v2896_v38 }
 0x253   : > { %v1199_v47 = vsel %vm1198_vm5, %v1194_v26, inf }
 0x254   : > { %1200 = vmin.xlane.f32.xlu1 %v1199_v47 }
 0x2a1   : > { %v795_v58 = vpop.xlane.xlu0 %794 }
 0x2a2   : > { %v796_v30 = vcvt.f32.s32 %v795_v58  ;;  %v994_v58 = vshll.u32 %v993_v12, 16 }
 0x2a4   : > { %v799_v49 = vadd.s32 %v798_v32, %v796_v30  ;;  %v784_v32 = vshll.u32 %v783_v59, 16  ;;  %v1007_v30 = vcvt.f32.s32 %v2779_v27  ;;  %v1336_v27 = vld [vmem:[#allocation3 + $0x8] sm:$0xff] }
 0x2a5   : > { %v1019_v46 = vpop.xlane.xlu0 %1018  ;;  %v809_v25 = vpop.xlane.xlu1 %808 }
 0x2a6   : > { %v1369_v9 = vsel %vm1240_vm6, %v799_v49, %v1337_v44  ;;  %v1020_v23 = vcvt.f32.s32 %v1019_v46  ;;  %v810_v8 = vcvt.f32.s32 %v809_v25 }
 0x2a7   : > { %1401 = vst.msk [vmem:[#allocation3 + $0x10] sm:$0xff] %vm181_vm1, %v1369_v9 }
 0x2a8   : > { %v1023_v51 = vadd.s32 %v1022_v62, %v1020_v23  ;;  %v813_v13 = vadd.s32 %v812_v61, %v810_v8 }
 0x2a9   : > { %v767_v40 = vpop.xlane.xlu0 %766  ;;  %v1033_v24 = vpop.xlane.xlu1 %1032 }
 0x2aa   : > { %v1385_v7 = vsel %vm1256_vm4, %v1023_v51, %v1353_v14  ;;  %v1370_v26 = vsel %vm1241_vm10, %v813_v13, %v1338_v54  ;;  %v768_v35 = vcvt.f32.s32 %v767_v40  ;;  %v1034_v47 = vcvt.f32.s32 %v1033_v24 }
 0x2ab   : > { %1417 = vst.msk [vmem:[#allocation3 + $0x90] sm:$0xff] %vm181_vm1, %v1385_v7  ;;  %1402 = vst.msk [vmem:[#allocation3 + $0x18] sm:$0xff] %vm181_vm1, %v1370_v26  ;;  %v854_v14 = vshll.u32 %v853_v39, 16  ;;  %v1008_v54 = vshll.u32 %v1007_v30, 16  ;;  %v1077_v51 = vcvt.f32.s32 %v2787_v11  ;;  %v867_v13 = vcvt.f32.s32 %v2789_v17  ;;  %v1341_v11 = vld [vmem:[#allocation3 + $0x30] sm:$0xff]  ;;  %v1352_v17 = vld [vmem:[#allocation3 + $0x88] sm:$0xff] }
 0x2ac   : > { %v771_v20 = vadd.s32 %v770_v28, %v768_v35  ;;  %v1037_v4 = vadd.s32 %v1036_v48, %v1034_v47 }
 0x2ad   : > { %v991_v44 = vpop.xlane.xlu0 %990  ;;  %v781_v49 = vpop.xlane.xlu1 %780 }
 0x2ae   : > { %v1436_v62 = vld [vmem:[#allocation3 + $0x10] sm:$0xff]  ;;  %v1367_v46 = vsel %vm1238_vm8, %v771_v20, %v1335_v53  ;;  %v1386_v3 = vsel %vm1257_vm14, %v1037_v4, %v1354_v16  ;;  %v992_v19 = vcvt.f32.s32 %v991_v44  ;;  %v782_v9 = vcvt.f32.s32 %v781_v49 }
 0x2af   : > { %1468 = vst.msk [vmem:[%s2923_s27 + $0x10] sm:$0xff] %vm181_vm1, %v1436_v62  ;;  %1399 = vst.msk [vmem:[#allocation3] sm:$0xff] %vm181_vm1, %v1367_v46  ;;  %v1078_v53 = vshll.u32 %v1077_v51, 16  ;;  %v868_v16 = vshll.u32 %v867_v13, 16  ;;  %v825_v20 = vcvt.f32.s32 %v2797_v52  ;;  %v1091_v4 = vcvt.f32.s32 %v2799_v57  ;;  %v1357_v52 = vld [vmem:[#allocation3 + $0xb0] sm:$0xff]  ;;  %v1342_v57 = vld [vmem:[#allocation3 + $0x38] sm:$0xff] }
 0x2b0   : > { %1418 = vst.msk [vmem:[#allocation3 + $0x98] sm:$0xff] %vm181_vm1, %v1386_v3  ;;  %v995_v23 = vadd.s32 %v994_v58, %v992_v19  ;;  %v785_v8 = vadd.s32 %v784_v32, %v782_v9 }
 0x2b1   : > { %v851_v28 = vpop.xlane.xlu0 %850  ;;  %v1005_v48 = vpop.xlane.xlu1 %1004  ;;  %v826_v9 = vshll.u32 %v825_v20, 16  ;;  %v3347_v20 = vld [vmem:[#allocation28_spill] sm:$0xff] }
 0x2b2   : > { %v1452_v12 = vld [vmem:[#allocation3 + $0x90] sm:$0xff]  ;;  %v1437_v59 = vld [vmem:[#allocation3 + $0x18] sm:$0xff]  ;;  %v1383_v18 = vsel %vm1254_vm12, %v995_v23, %v1351_v21  ;;  %v1368_v60 = vsel %vm1239_vm3, %v785_v8, %v1336_v27  ;;  %v852_v15 = vcvt.f32.s32 %v851_v28  ;;  %v1006_v26 = vcvt.f32.s32 %v1005_v48 }
 0x2b3   : > { %1484 = vst.msk [vmem:[%s2923_s27 + $0x90] sm:$0xff] %vm181_vm1, %v1452_v12  ;;  %1469 = vst.msk [vmem:[%s2923_s27 + $0x18] sm:$0xff] %vm181_vm1, %v1437_v59  ;;  %v1092_v21 = vshll.u32 %v1091_v4, 16  ;;  %v1049_v27 = vcvt.f32.s32 %v2807_v63  ;;  %v839_v23 = vcvt.f32.s32 %v2809_v41  ;;  %v1339_v63 = vld [vmem:[#allocation3 + $0x20] sm:$0xff]  ;;  %v1358_v41 = vld [vmem:[#allocation3 + $0xb8] sm:$0xff]  ;;  %v881_v12 = vcvt.f32.s32 %v2837_v37 }
 0x2b4   : > { %1415 = vst.msk [vmem:[#allocation3 + $0x80] sm:$0xff] %vm181_vm1, %v1383_v18  ;;  %1400 = vst.msk [vmem:[#allocation3 + $0x8] sm:$0xff] %vm181_vm1, %v1368_v60  ;;  %v855_v35 = vadd.s32 %v854_v14, %v852_v15  ;;  %v1009_v47 = vadd.s32 %v1008_v54, %v1006_v26  ;;  %v909_v26 = vcvt.f32.s32 %v2817_v34  ;;  %v1355_v34 = vld [vmem:[#allocation3 + $0xa0] sm:$0xff]  ;;  %v1147_v59 = vcvt.f32.s32 %v2839_v45  ;;  %v1361_v37 = vld [vmem:[#allocation3 + $0xd0] sm:$0xff] }
 0x2b5   : > { %v1075_v58 = vpop.xlane.xlu0 %1074  ;;  %v865_v32 = vpop.xlane.xlu1 %864  ;;  %v1050_v60 = vshll.u32 %v1049_v27, 16  ;;  %v840_v15 = vshll.u32 %v839_v23, 16  ;;  %v3355_v27 = vld [vmem:[#allocation31_spill] sm:$0xff]  ;;  %v3356_v23 = vld [vmem:[#allocation29_spill] sm:$0xff] }
 0x2b6   : > { %v1434_v39 = vld [vmem:[#allocation3] sm:$0xff]  ;;  %v1373_v62 = vsel %vm1244_vm7, %v855_v35, %v1341_v11  ;;  %v1384_v46 = vsel %vm1255_vm0, %v1009_v47, %v1352_v17  ;;  %v1076_v25 = vcvt.f32.s32 %v1075_v58  ;;  %v866_v61 = vcvt.f32.s32 %v865_v32  ;;  %v3349_v58 = vld [vmem:[#allocation27_spill] sm:$0xff]  ;;  %v3350_v32 = vld [vmem:[#allocation25_spill] sm:$0xff] }
 0x2b7   : > { %v1453_v30 = vld [vmem:[#allocation3 + $0x98] sm:$0xff]  ;;  %1466 = vst.msk [vmem:[%s2923_s27] sm:$0xff] %vm181_vm1, %v1434_v39  ;;  %1405 = vst.msk [vmem:[#allocation3 + $0x30] sm:$0xff] %vm181_vm1, %v1373_v62  ;;  %v1063_v11 = vcvt.f32.s32 %v2819_v42  ;;  %vm3351_vm6 = vcmp.gt.f32.partialorder %v3349_v58, %v3350_v32  ;;  %v1340_v42 = vld [vmem:[#allocation3 + $0x28] sm:$0xff]  ;;  %v910_v6 = vshll.u32 %v909_v26, 16  ;;  %vm3357_vm10 = vcmp.gt.f32.partialorder %v3355_v27, %v3356_v23 }
 0x2b8   : > { %1485 = vst.msk [vmem:[%s2923_s27 + $0x98] sm:$0xff] %vm181_vm1, %v1453_v30  ;;  %1416 = vst.msk [vmem:[#allocation3 + $0x88] sm:$0xff] %vm181_vm1, %v1384_v46  ;;  %v1079_v3 = vadd.s32 %v1078_v53, %v1076_v25  ;;  %v869_v19 = vadd.s32 %v868_v16, %v866_v61  ;;  %v3346_v16 = vld [vmem:[#allocation30_spill] sm:$0xff]  ;;  %v1133_v46 = vcvt.f32.s32 %v2827_v36  ;;  %v923_v25 = vcvt.f32.s32 %v2829_v29  ;;  %v1356_v29 = vld [vmem:[#allocation3 + $0xa8] sm:$0xff] }
 0x2b9   : > { %v823_v8 = vpop.xlane.xlu0 %822  ;;  %v1089_v14 = vpop.xlane.xlu1 %1088  ;;  %vm3348_vm4 = vcmp.gt.f32.partialorder %v3346_v16, %v3347_v20  ;;  %v1064_v31 = vshll.u32 %v1063_v11, 16  ;;  %v1345_v36 = vld [vmem:[#allocation3 + $0x50] sm:$0xff]  ;;  %v1346_v45 = vld [vmem:[#allocation3 + $0x58] sm:$0xff]  ;;  %v1148_v16 = vshll.u32 %v1147_v59, 16  ;;  %v1105_v20 = vcvt.f32.s32 %v2847_v10  ;;  %v1343_v10 = vld [vmem:[#allocation3 + $0x40] sm:$0xff] }
 0x2ba   : > { %v1389_v48 = vsel %vm1260_vm15, %v1079_v3, %v1357_v52  ;;  %v1374_v40 = vsel %vm1245_vm11, %v869_v19, %v1342_v57  ;;  %v824_v24 = vcvt.f32.s32 %v823_v8  ;;  %v1090_v18 = vcvt.f32.s32 %v1089_v14  ;;  %v3352_v19 = vld [vmem:[#allocation34_spill] sm:$0xff] }
 0x2bb   : > { %v1450_v54 = vld [vmem:[#allocation3 + $0x80] sm:$0xff]  ;;  %v1435_v51 = vld [vmem:[#allocation3 + $0x8] sm:$0xff]  ;;  %1421 = vst.msk [vmem:[#allocation3 + $0xb0] sm:$0xff] %vm181_vm1, %v1389_v48  ;;  %1406 = vst.msk [vmem:[#allocation3 + $0x38] sm:$0xff] %vm181_vm1, %v1374_v40  ;;  %v1134_v28 = vshll.u32 %v1133_v46, 16  ;;  %v924_v48 = vshll.u32 %v923_v25, 16 }
 0x2bc   : > { %1482 = vst.msk [vmem:[%s2923_s27 + $0x80] sm:$0xff] %vm181_vm1, %v1450_v54  ;;  %1467 = vst.msk [vmem:[%s2923_s27 + $0x8] sm:$0xff] %vm181_vm1, %v1435_v51  ;;  %v827_v2 = vadd.s32 %v826_v9, %v824_v24  ;;  %v1093_v7 = vadd.s32 %v1092_v21, %v1090_v18  ;;  %v3353_v9 = vld [vmem:[#allocation32_spill] sm:$0xff] }
 0x2bd   : > { %v1047_v17 = vpop.xlane.xlu0 %1046  ;;  %v837_v35 = vpop.xlane.xlu1 %836  ;;  %vm3354_vm8 = vcmp.gt.f32.partialorder %v3352_v19, %v3353_v9  ;;  %v1119_v19 = vcvt.f32.s32 %v2859_v0  ;;  %v1344_v0 = vld [vmem:[#allocation3 + $0x48] sm:$0xff] }
 0x2be   : > { %v1440_v47 = vld [vmem:[#allocation3 + $0x30] sm:$0xff]  ;;  %v1371_v4 = vsel %vm3348_vm4, %v827_v2, %v1339_v63  ;;  %v1390_v39 = vsel %vm3351_vm6, %v1093_v7, %v1358_v41  ;;  %v1048_v30 = vcvt.f32.s32 %v1047_v17  ;;  %v838_v44 = vcvt.f32.s32 %v837_v35  ;;  %v3359_v2 = vld [vmem:[#allocation36_spill] sm:$0xff] }
 0x2bf   : > { %v1451_v53 = vld [vmem:[#allocation3 + $0x88] sm:$0xff]  ;;  %1472 = vst.msk [vmem:[%s2923_s27 + $0x30] sm:$0xff] %vm181_vm1, %v1440_v47  ;;  %1403 = vst.msk [vmem:[#allocation3 + $0x20] sm:$0xff] %vm181_vm1, %v1371_v4  ;;  %v3358_v41 = vld [vmem:[#allocation38_spill] sm:$0xff]  ;;  %v895_v4 = vcvt.f32.s32 %v2849_v43 }
 0x2c0   : > { %1483 = vst.msk [vmem:[%s2923_s27 + $0x88] sm:$0xff] %vm181_vm1, %v1451_v53  ;;  %1422 = vst.msk [vmem:[#allocation3 + $0xb8] sm:$0xff] %vm181_vm1, %v1390_v39  ;;  %v1051_v49 = vadd.s32 %v1050_v60, %v1048_v30  ;;  %v841_v62 = vadd.s32 %v840_v15, %v838_v44  ;;  %vm3360_vm12 = vcmp.gt.f32.partialorder %v3358_v41, %v3359_v2  ;;  %v3361_v60 = vld [vmem:[#allocation35_spill] sm:$0xff]  ;;  %v3362_v15 = vld [vmem:[#allocation33_spill] sm:$0xff]  ;;  %v882_v53 = vshll.u32 %v881_v12, 16 }
 0x2c1   : > { %v907_v61 = vpop.xlane.xlu0 %906  ;;  %v1061_v52 = vpop.xlane.xlu1 %1060  ;;  %vm3363_vm14 = vcmp.gt.f32.partialorder %v3361_v60, %v3362_v15  ;;  %v3364_v44 = vld [vmem:[#allocation42_spill] sm:$0xff]  ;;  %v1362_v43 = vld [vmem:[#allocation3 + $0xd8] sm:$0xff]  ;;  %v3377_v15 = vld [vmem:[#allocation48_spill] sm:$0xff] }
 0x2c2   : > { %v1456_v57 = vld [vmem:[#allocation3 + $0xb0] sm:$0xff]  ;;  %v1441_v3 = vld [vmem:[#allocation3 + $0x38] sm:$0xff]  ;;  %v1387_v21 = vsel %vm3354_vm8, %v1051_v49, %v1355_v34  ;;  %v1372_v8 = vsel %vm3357_vm10, %v841_v62, %v1340_v42  ;;  %v908_v14 = vcvt.f32.s32 %v907_v61  ;;  %v1062_v54 = vcvt.f32.s32 %v1061_v52  ;;  %v3365_v34 = vld [vmem:[#allocation40_spill] sm:$0xff] }
 0x2c3   : > { %1488 = vst.msk [vmem:[%s2923_s27 + $0xb0] sm:$0xff] %vm181_vm1, %v1456_v57  ;;  %1473 = vst.msk [vmem:[%s2923_s27 + $0x38] sm:$0xff] %vm181_vm1, %v1441_v3  ;;  %vm3366_vm0 = vcmp.gt.f32.partialorder %v3364_v44, %v3365_v34  ;;  %v3367_v49 = vld [vmem:[#allocation39_spill] sm:$0xff]  ;;  %v3368_v62 = vld [vmem:[#allocation37_spill] sm:$0xff]  ;;  %v1106_v52 = vshll.u32 %v1105_v20, 16  ;;  %v896_v57 = vshll.u32 %v895_v4, 16  ;;  %v965_v3 = vcvt.f32.s32 %v2857_v33 }
 0x2c4   : > { %1419 = vst.msk [vmem:[#allocation3 + $0xa0] sm:$0xff] %vm181_vm1, %v1387_v21  ;;  %1404 = vst.msk [vmem:[#allocation3 + $0x28] sm:$0xff] %vm181_vm1, %v1372_v8  ;;  %v911_v51 = vadd.s32 %v910_v6, %v908_v14  ;;  %v1065_v13 = vadd.s32 %v1064_v31, %v1062_v54  ;;  %vm3369_vm3 = vcmp.gt.f32.partialorder %v3367_v49, %v3368_v62  ;;  %v3370_v8 = vld [vmem:[#allocation46_spill] sm:$0xff]  ;;  %v3371_v14 = vld [vmem:[#allocation44_spill] sm:$0xff]  ;;  %v1161_v4 = vcvt.f32.s32 %v2877_v50 }
 0x2c5   : > { %v1131_v40 = vpop.xlane.xlu0 %1130  ;;  %v921_v24 = vpop.xlane.xlu1 %920  ;;  %vm3372_vm7 = vcmp.gt.f32.partialorder %v3370_v8, %v3371_v14  ;;  %v1359_v33 = vld [vmem:[#allocation3 + $0xc0] sm:$0xff]  ;;  %v966_v59 = vshll.u32 %v965_v3, 16  ;;  %v3376_v60 = vld [vmem:[#allocation50_spill] sm:$0xff]  ;;  %v3385_v62 = vld [vmem:[#allocation51_spill] sm:$0xff]  ;;  %v1175_v3 = vcvt.f32.s32 %v2889_v22 }
 0x2c6   : > { %v1438_v18 = vld [vmem:[#allocation3 + $0x20] sm:$0xff]  ;;  %v1377_v7 = vsel %vm3360_vm12, %v911_v51, %v1345_v36  ;;  %v1388_v26 = vsel %vm3363_vm14, %v1065_v13, %v1356_v29  ;;  %v1132_v11 = vcvt.f32.s32 %v1131_v40  ;;  %v922_v17 = vcvt.f32.s32 %v921_v24  ;;  %v3373_v36 = vld [vmem:[#allocation43_spill] sm:$0xff]  ;;  %v3374_v29 = vld [vmem:[#allocation41_spill] sm:$0xff] }
 0x2c7   : > { %v1457_v63 = vld [vmem:[#allocation3 + $0xb8] sm:$0xff]  ;;  %1470 = vst.msk [vmem:[%s2923_s27 + $0x20] sm:$0xff] %vm181_vm1, %v1438_v18  ;;  %1409 = vst.msk [vmem:[#allocation3 + $0x50] sm:$0xff] %vm181_vm1, %v1377_v7  ;;  %vm3375_vm11 = vcmp.gt.f32.partialorder %v3373_v36, %v3374_v29  ;;  %v1120_v40 = vshll.u32 %v1119_v19, 16  ;;  %v937_v24 = vcvt.f32.s32 %v2867_v55  ;;  %v979_v18 = vcvt.f32.s32 %v2869_v1  ;;  %v1349_v55 = vld [vmem:[#allocation3 + $0x70] sm:$0xff] }
 0x2c8   : > { %1489 = vst.msk [vmem:[%s2923_s27 + $0xb8] sm:$0xff] %vm181_vm1, %v1457_v63  ;;  %1420 = vst.msk [vmem:[#allocation3 + $0xa8] sm:$0xff] %vm181_vm1, %v1388_v26  ;;  %v1135_v35 = vadd.s32 %v1134_v28, %v1132_v11  ;;  %v925_v47 = vadd.s32 %v924_v48, %v922_v17  ;;  %vm3378_vm15 = vcmp.gt.f32.partialorder %v3376_v60, %v3377_v15  ;;  %v3379_v11 = vld [vmem:[#allocation47_spill] sm:$0xff]  ;;  %v3380_v17 = vld [vmem:[#allocation45_spill] sm:$0xff] }
 0x2c9   : > { %v879_v58 = vpop.xlane.xlu0 %878  ;;  %v1145_v32 = vpop.xlane.xlu1 %1144  ;;  %vm3381_vm9 = vcmp.gt.f32.partialorder %v3379_v11, %v3380_v17  ;;  %v1360_v1 = vld [vmem:[#allocation3 + $0xc8] sm:$0xff]  ;;  %v980_v20 = vshll.u32 %v979_v18, 16  ;;  %v3382_v34 = vld [vmem:[#allocation56_spill] sm:$0xff]  ;;  %v3389_v8 = vld [vmem:[#allocation59_spill] sm:$0xff] }
 0x2ca   : > { %v1393_v42 = vsel %vm3366_vm0, %v1135_v35, %v1361_v37  ;;  %v1378_v6 = vsel %vm3369_vm3, %v925_v47, %v1346_v45  ;;  %v880_v31 = vcvt.f32.s32 %v879_v58  ;;  %v1146_v46 = vcvt.f32.s32 %v1145_v32  ;;  %v1347_v50 = vld [vmem:[#allocation3 + $0x60] sm:$0xff]  ;;  %v3392_v36 = vld [vmem:[#allocation54_spill] sm:$0xff]  ;;  %v1348_v22 = vld [vmem:[#allocation3 + $0x68] sm:$0xff] }
 0x2cb   : > { %v1454_v39 = vld [vmem:[#allocation3 + $0xa0] sm:$0xff]  ;;  %v1439_v30 = vld [vmem:[#allocation3 + $0x28] sm:$0xff]  ;;  %1425 = vst.msk [vmem:[#allocation3 + $0xd0] sm:$0xff] %vm181_vm1, %v1393_v42  ;;  %1410 = vst.msk [vmem:[#allocation3 + $0x58] sm:$0xff] %vm181_vm1, %v1378_v6  ;;  %v951_v58 = vcvt.f32.s32 %v2879_v56 }
 0x2cc   : > { %1486 = vst.msk [vmem:[%s2923_s27 + $0xa0] sm:$0xff] %vm181_vm1, %v1454_v39  ;;  %1471 = vst.msk [vmem:[%s2923_s27 + $0x28] sm:$0xff] %vm181_vm1, %v1439_v30  ;;  %v883_v25 = vadd.s32 %v882_v53, %v880_v31  ;;  %v1149_v61 = vadd.s32 %v1148_v16, %v1146_v46  ;;  %v938_v16 = vshll.u32 %v937_v24, 16  ;;  %v3383_v42 = vld [vmem:[#allocation53_spill] sm:$0xff]  ;;  %v1350_v56 = vld [vmem:[#allocation3 + $0x78] sm:$0xff] }
 0x2cd   : > { %v1103_v9 = vpop.xlane.xlu0 %1102  ;;  %v893_v21 = vpop.xlane.xlu1 %892  ;;  %vm3384_vm13 = vcmp.gt.f32.partialorder %v3382_v34, %v3383_v42  ;;  %v3386_v6 = vld [vmem:[#allocation49_spill] sm:$0xff]  ;;  %v3398_v60 = vld [vmem:[#allocation60_spill] sm:$0xff] }
 0x2ce   : > { %v1444_v27 = vld [vmem:[#allocation3 + $0x50] sm:$0xff]  ;;  %v1375_v54 = vsel %vm3372_vm7, %v883_v25, %v1343_v10  ;;  %v1394_v51 = vsel %vm3375_vm11, %v1149_v61, %v1362_v43  ;;  %v1104_v13 = vcvt.f32.s32 %v1103_v9  ;;  %v894_v28 = vcvt.f32.s32 %v893_v21  ;;  %v1364_v17 = vld [vmem:[#allocation3 + $0xe8] sm:$0xff] }
 0x2cf   : > { %v1455_v23 = vld [vmem:[#allocation3 + $0xa8] sm:$0xff]  ;;  %1476 = vst.msk [vmem:[%s2923_s27 + $0x50] sm:$0xff] %vm181_vm1, %v1444_v27  ;;  %1407 = vst.msk [vmem:[#allocation3 + $0x40] sm:$0xff] %vm181_vm1, %v1375_v54  ;;  %vm3387_vm2 = vcmp.gt.f32.partialorder %v3385_v62, %v3386_v6  ;;  %v1162_v61 = vshll.u32 %v1161_v4, 16  ;;  %v3407_v62 = vld [vmem:[#allocation71_spill] sm:$0xff] }
 0x2d0   : > { %1487 = vst.msk [vmem:[%s2923_s27 + $0xa8] sm:$0xff] %vm181_vm1, %v1455_v23  ;;  %1426 = vst.msk [vmem:[#allocation3 + $0xd8] sm:$0xff] %vm181_vm1, %v1394_v51  ;;  %v1107_v48 = vadd.s32 %v1106_v52, %v1104_v13  ;;  %v897_v12 = vadd.s32 %v896_v57, %v894_v28  ;;  %v952_v52 = vshll.u32 %v951_v58, 16  ;;  %v1189_v57 = vcvt.f32.s32 %v2887_v5  ;;  %v3388_v23 = vld [vmem:[#allocation62_spill] sm:$0xff]  ;;  %v3391_v54 = vld [vmem:[#allocation57_spill] sm:$0xff] }
 0x2d1   : > { %v963_v63 = vpop.xlane.xlu0 %962  ;;  %v1117_v41 = vpop.xlane.xlu1 %1116  ;;  %vm3390_vm5 = vcmp.gt.f32.partialorder %v3388_v23, %v3389_v8  ;;  %vm3393_vm4 = vcmp.gt.f32.partialorder %v3391_v54, %v3392_v36  ;;  %v1363_v5 = vld [vmem:[#allocation3 + $0xe0] sm:$0xff]  ;;  %v3403_v4 = vld [vmem:[#allocation69_spill] sm:$0xff]  ;;  %v3404_v58 = vld [vmem:[#allocation66_spill] sm:$0xff] }
 0x2d2   : > { %v1460_v2 = vld [vmem:[#allocation3 + $0xd0] sm:$0xff]  ;;  %v1445_v7 = vld [vmem:[#allocation3 + $0x58] sm:$0xff]  ;;  %v1391_v26 = vsel %vm3378_vm15, %v1107_v48, %v1359_v33  ;;  %v1376_v37 = vsel %vm3381_vm9, %v897_v12, %v1344_v0  ;;  %v964_v45 = vcvt.f32.s32 %v963_v63  ;;  %v1118_v35 = vcvt.f32.s32 %v1117_v41  ;;  %v3394_v63 = vld [vmem:[#allocation68_spill] sm:$0xff] }
 0x2d3   : > { %1492 = vst.msk [vmem:[%s2923_s27 + $0xd0] sm:$0xff] %vm181_vm1, %v1460_v2  ;;  %1477 = vst.msk [vmem:[%s2923_s27 + $0x58] sm:$0xff] %vm181_vm1, %v1445_v7  ;;  %v1190_v0 = vshll.u32 %v1189_v57, 16  ;;  %v1176_v48 = vshll.u32 %v1175_v3, 16  ;;  %v1203_v12 = vcvt.f32.s32 %v2896_v38  ;;  %v3395_v41 = vld [vmem:[#allocation65_spill] sm:$0xff]  ;;  %v3397_v7 = vld [vmem:[#allocation63_spill] sm:$0xff]  ;;  %vm3405_vm12 = vcmp.gt.f32.partialorder %v3403_v4, %v3404_v58 }
 0x2d4   : > { %1423 = vst.msk [vmem:[#allocation3 + $0xc0] sm:$0xff] %vm181_vm1, %v1391_v26  ;;  %1408 = vst.msk [vmem:[#allocation3 + $0x48] sm:$0xff] %vm181_vm1, %v1376_v37  ;;  %v967_v47 = vadd.s32 %v966_v59, %v964_v45  ;;  %v1121_v53 = vadd.s32 %v1120_v40, %v1118_v35  ;;  %vm3396_vm6 = vcmp.gt.f32.partialorder %v3394_v63, %v3395_v41  ;;  %v1365_v38 = vld [vmem:[#allocation3 + $0xf0] sm:$0xff] }
 0x2d5   : > { %v935_v32 = vpop.xlane.xlu0 %934  ;;  %v977_v39 = vpop.xlane.xlu1 %976  ;;  %vm3399_vm8 = vcmp.gt.f32.partialorder %v3397_v7, %v3398_v60 }
 0x2d6   : > { %v1442_v30 = vld [vmem:[#allocation3 + $0x40] sm:$0xff]  ;;  %v1381_v49 = vsel %vm3384_vm13, %v967_v47, %v1349_v55  ;;  %v1392_v31 = vsel %vm3387_vm2, %v1121_v53, %v1360_v1  ;;  %v936_v46 = vcvt.f32.s32 %v935_v32  ;;  %v978_v10 = vcvt.f32.s32 %v977_v39  ;;  %v3400_v53 = vld [vmem:[#allocation73_spill] sm:$0xff] }
 0x2d7   : > { %v1461_v44 = vld [vmem:[#allocation3 + $0xd8] sm:$0xff]  ;;  %1474 = vst.msk [vmem:[%s2923_s27 + $0x40] sm:$0xff] %vm181_vm1, %v1442_v30  ;;  %1413 = vst.msk [vmem:[#allocation3 + $0x70] sm:$0xff] %vm181_vm1, %v1381_v49  ;;  %v1204_v55 = vshll.u32 %v1203_v12, 16  ;;  %v3406_v49 = vld [vmem:[#allocation74_spill] sm:$0xff] }
 0x2d8   : > { %1493 = vst.msk [vmem:[%s2923_s27 + $0xd8] sm:$0xff] %vm181_vm1, %v1461_v44  ;;  %1424 = vst.msk [vmem:[#allocation3 + $0xc8] sm:$0xff] %vm181_vm1, %v1392_v31  ;;  %v939_v43 = vadd.s32 %v938_v16, %v936_v46  ;;  %v981_v25 = vadd.s32 %v980_v20, %v978_v10  ;;  %v3401_v16 = vld [vmem:[#allocation70_spill] sm:$0xff]  ;;  %v1366_v30 = vld [vmem:[#allocation3 + $0xf8] sm:$0xff]  ;;  %vm3408_vm14 = vcmp.gt.f32.partialorder %v3406_v49, %v3407_v62 }
 0x2d9   : > { %v1159_v19 = vpop.xlane.xlu0 %1158  ;;  %v949_v9 = vpop.xlane.xlu1 %948  ;;  %vm3402_vm10 = vcmp.gt.f32.partialorder %v3400_v53, %v3401_v16 }
 0x2da   : > { %v1379_v14 = vsel %vm3390_vm5, %v939_v43, %v1347_v50  ;;  %v1382_v29 = vsel %vm3393_vm4, %v981_v25, %v1350_v56  ;;  %v1160_v51 = vcvt.f32.s32 %v1159_v19  ;;  %v950_v13 = vcvt.f32.s32 %v949_v9 }
 0x2db   : > { %v1458_v21 = vld [vmem:[#allocation3 + $0xc0] sm:$0xff]  ;;  %v1443_v27 = vld [vmem:[#allocation3 + $0x48] sm:$0xff]  ;;  %1411 = vst.msk [vmem:[#allocation3 + $0x60] sm:$0xff] %vm181_vm1, %v1379_v14  ;;  %1414 = vst.msk [vmem:[#allocation3 + $0x78] sm:$0xff] %vm181_vm1, %v1382_v29 }
 0x2dc   : > { %1490 = vst.msk [vmem:[%s2923_s27 + $0xc0] sm:$0xff] %vm181_vm1, %v1458_v21  ;;  %1475 = vst.msk [vmem:[%s2923_s27 + $0x48] sm:$0xff] %vm181_vm1, %v1443_v27  ;;  %v1163_v28 = vadd.s32 %v1162_v61, %v1160_v51  ;;  %v953_v33 = vadd.s32 %v952_v52, %v950_v13 }
 0x2dd   : > { %v1187_v59 = vpop.xlane.xlu0 %1186  ;;  %v1173_v40 = vpop.xlane.xlu1 %1172 }
 0x2de   : > { %v1448_v24 = vld [vmem:[#allocation3 + $0x70] sm:$0xff]  ;;  %v1395_v2 = vsel %vm3396_vm6, %v1163_v28, %v1363_v5  ;;  %v1380_v15 = vsel %vm3399_vm8, %v953_v33, %v1348_v22  ;;  %v1188_v26 = vcvt.f32.s32 %v1187_v59  ;;  %v1174_v11 = vcvt.f32.s32 %v1173_v40 }
 0x2df   : > { %v1459_v18 = vld [vmem:[#allocation3 + $0xc8] sm:$0xff]  ;;  %1480 = vst.msk [vmem:[%s2923_s27 + $0x70] sm:$0xff] %vm181_vm1, %v1448_v24  ;;  %1427 = vst.msk [vmem:[#allocation3 + $0xe0] sm:$0xff] %vm181_vm1, %v1395_v2 }
 0x2e0   : > { %1491 = vst.msk [vmem:[%s2923_s27 + $0xc8] sm:$0xff] %vm181_vm1, %v1459_v18  ;;  %1412 = vst.msk [vmem:[#allocation3 + $0x68] sm:$0xff] %vm181_vm1, %v1380_v15  ;;  %v1191_v37 = vadd.s32 %v1190_v0, %v1188_v26  ;;  %v1177_v45 = vadd.s32 %v1176_v48, %v1174_v11 }
 0x2e1   : > { %v1201_v35 = vpop.xlane.xlu1 %1200 }
 0x2e2   : > { %v1446_v1 = vld [vmem:[#allocation3 + $0x60] sm:$0xff]  ;;  %v1449_v47 = vld [vmem:[#allocation3 + $0x78] sm:$0xff]  ;;  %v1397_v20 = vsel %vm3402_vm10, %v1191_v37, %v1365_v38  ;;  %v1396_v32 = vsel %vm3405_vm12, %v1177_v45, %v1364_v17  ;;  %v1202_v39 = vcvt.f32.s32 %v1201_v35 }
 0x2e3   : > { %1478 = vst.msk [vmem:[%s2923_s27 + $0x60] sm:$0xff] %vm181_vm1, %v1446_v1  ;;  %1481 = vst.msk [vmem:[%s2923_s27 + $0x78] sm:$0xff] %vm181_vm1, %v1449_v47 }
 0x2e4   : > { %1429 = vst.msk [vmem:[#allocation3 + $0xf0] sm:$0xff] %vm181_vm1, %v1397_v20  ;;  %1428 = vst.msk [vmem:[#allocation3 + $0xe8] sm:$0xff] %vm181_vm1, %v1396_v32  ;;  %v1205_v44 = vadd.s32 %v1204_v55, %v1202_v39 }
 0x2e6   : > { %v1462_v34 = vld [vmem:[#allocation3 + $0xe0] sm:$0xff]  ;;  %v1398_v6 = vsel %vm3408_vm14, %v1205_v44, %v1366_v30 }
 0x2e7   : > { %v1447_v42 = vld [vmem:[#allocation3 + $0x68] sm:$0xff]  ;;  %1494 = vst.msk [vmem:[%s2923_s27 + $0xe0] sm:$0xff] %vm181_vm1, %v1462_v34  ;;  %1430 = vst.msk [vmem:[#allocation3 + $0xf8] sm:$0xff] %vm181_vm1, %v1398_v6 }
 0x2e8   : > { %1479 = vst.msk [vmem:[%s2923_s27 + $0x68] sm:$0xff] %vm181_vm1, %v1447_v42 }
 0x2eb   : > { %v1464_v31 = vld [vmem:[#allocation3 + $0xf0] sm:$0xff]  ;;  %v1463_v46 = vld [vmem:[#allocation3 + $0xe8] sm:$0xff] }
 0x2ec   : > { %1496 = vst.msk [vmem:[%s2923_s27 + $0xf0] sm:$0xff] %vm181_vm1, %v1464_v31  ;;  %1495 = vst.msk [vmem:[%s2923_s27 + $0xe8] sm:$0xff] %vm181_vm1, %v1463_v46 }
 0x2ee   : > { %v1465_v10 = vld [vmem:[#allocation3 + $0xf8] sm:$0xff] }
 0x2ef   : > { %1497 = vst.msk [vmem:[%s2923_s27 + $0xf8] sm:$0xff] %vm181_vm1, %v1465_v10 }
 0x2f0 PF: > { %s12_s11 = sadd.s32 1, %s1755_s11   ;;  %s3409_s9 = smov %s1751_s10 }
 0x2f1   : > { %p9_p5 = scmp.ge.s32.totalorder %s12_s11, 4   ;;  %s3410_s10 = smov %s3412_s12 }
 0x2f3   :  { %11 = sbr.rel (!%p9_p5) target bundleno = 2 (0x2), region = 69 }

</bundles_post_ra>
